<compile_context>
chip_gen: v6e
topology: v6e:2x2x1
jax: 0.10.0
libtpu: 0.0.40
codegen_flags: <defaults>
</compile_context>

<pallas_src>
import functools

import jax
import jax.numpy as jnp
import numpy as np
from jax.experimental import pallas as pl
from jax.experimental.pallas import tpu as pltpu


def _round_up(x, m):
    return ((x + m - 1) // m) * m


def chebyshev_matrices(Lf, K):
    """[T_1(L), ..., T_{K-1}(L)] in float32 (T_0 = I is omitted)."""
    if K <= 1:
        return []
    mats = [Lf]
    t0, t1 = jnp.eye(Lf.shape[0], dtype=Lf.dtype), Lf
    for _ in range(2, K):
        t2 = 2.0 * (Lf @ t1) - t0
        mats.append(t2)
        t0, t1 = t1, t2
    return mats


def gcn_resblock_kernel(*refs, K, mid_p, out_p, mid_true, out_true,
                        use_stack, fuse_shortcut):
    """One batch tile: x_ref (TB, V, Fin_p) -> o_ref (TB, V, out_p)."""
    if fuse_shortcut:
        (x_ref, prop_ref, w1_ref, b1_ref, g2_ref, be2_ref,
         w2_ref, b2_ref, g3_ref, be3_ref, o_ref) = refs
    else:
        (x_ref, prop_ref, w1_ref, b1_ref, scw_ref, scb_ref, g2_ref, be2_ref,
         w2_ref, b2_ref, g3_ref, be3_ref, o_ref) = refs

    TB, V, _ = x_ref.shape
    cd = prop_ref.dtype                        # MXU compute dtype (bf16)

    # Grid-invariant operands: load once, reuse across the per-sample loop.
    prop = prop_ref[...]
    w1, b1 = w1_ref[...], b1_ref[...]
    w2, b2 = w2_ref[...], b2_ref[...]
    g2, be2 = g2_ref[...], be2_ref[...]
    g3, be3 = g3_ref[...], be3_ref[...]
    if not fuse_shortcut:
        scw, scb = scw_ref[...], scb_ref[...]

    def layernorm_pad(z, gamma, beta, n_true, eps=1e-6):
        # Padded feature columns of z are exactly zero and gamma/beta are
        # zero-padded, so lane-axis sums equal sums over the true features;
        # divide by the true width.  Padded columns come out as exactly 0.
        inv_n = 1.0 / n_true
        mu = jnp.sum(z, axis=-1, keepdims=True) * inv_n
        var = jnp.sum(z * z, axis=-1, keepdims=True) * inv_n - mu * mu
        return (z - mu) * jax.lax.rsqrt(var + eps) * gamma + beta

    def cheby_cat(xb):
        """[T_0 .. T_{K-1}](L) @ xb concatenated on lanes.

        xb: (V, F_p) bf16.  Returns (V, K*F_p) bf16 with column k*F_p + f,
        matching the pre-rearranged fc weights built by the wrapper.
        """
        terms = [xb]
        if K > 1:
            if use_stack:
                # Single propagation matmul against the stacked T_k matrices.
                y = jnp.dot(prop, xb, preferred_element_type=jnp.float32)
                for k in range(1, K):
                    terms.append(y[(k - 1) * V:k * V, :].astype(cd))
            else:
                # In-kernel recursion: T_k = 2 L T_{k-1} - T_{k-2}.
                t0 = xb
                t1 = jnp.dot(prop, xb, preferred_element_type=jnp.float32)
                terms.append(t1.astype(cd))
                for _ in range(2, K):
                    t2 = 2.0 * jnp.dot(prop, t1.astype(cd),
                                       preferred_element_type=jnp.float32) - t0
                    terms.append(t2.astype(cd))
                    t0, t1 = t1, t2
        return terms[0] if K == 1 else jnp.concatenate(terms, axis=-1)

    # NOTE: relu(norm1(x)) in the PyTorch forward is dead code (its result is
    # overwritten before use), so it is intentionally not computed here.
    for b in range(TB):                        # static unroll; 2-D MXU matmuls
        xb = x_ref[b]                                          # (V, Fin_p) bf16

        # ---- first Chebyshev conv (+ optionally fused shortcut) -------------
        tcat = cheby_cat(xb)                                   # (V, K*Fin_p)
        y = jnp.dot(tcat, w1, preferred_element_type=jnp.float32) + b1
        if fuse_shortcut:
            h1_pre = y[:, :mid_p]                              # fc1 output
            sc = y[:, mid_p:]                                  # shortcut output
        else:
            h1_pre = y
            sc = jnp.dot(xb, scw, preferred_element_type=jnp.float32) + scb
        h1 = jnp.maximum(layernorm_pad(h1_pre, g2, be2, mid_true), 0.0)

        # ---- second Chebyshev conv ------------------------------------------
        scat = cheby_cat(h1.astype(cd))                        # (V, K*mid_p)
        h2 = jnp.dot(scat, w2, preferred_element_type=jnp.float32) + b2

        # nn.Dropout(p=0.01) is the identity in eval mode.
        # TODO(synk): training-mode dropout (pltpu.prng_* mask) not implemented.
        o_ref[b] = layernorm_pad(h2 + sc, g3, be3, out_true)   # (V, out_p) f32


def gcn_resblock(x, graph_L, params, graph_k, *,
                 compute_dtype=jnp.bfloat16,
                 feat_align=128,
                 min_grid_steps=1,
                 batch_tile=None,
                 use_cheby_stack=None,
                 cheby_stack_budget_bytes=8 << 20,
                 fuse_shortcut=None,
                 single_buffer_invariants=True):
    """GCN_ResBlock forward (eval mode).

    x: (B, V, Fin) float32.  params hold torch-layout weights (see __main__).
    The module itself requires mid_dim == out_dim (norm2 is LayerNorm(out_dim)
    applied to fc1's mid_dim output).  Set min_grid_steps=2 on v7x so the
    "parallel" batch axis feeds both TensorCores; on v5e/v6e (one TensorCore)
    the default keeps the largest batch tile that fits the VMEM budget.
    """
    B, V, Fin = x.shape
    K = int(graph_k)
    mid = params["fc1_b"].shape[0]
    out_dim = params["sc_b"].shape[0]
    cd = compute_dtype
    cd_nbytes = jnp.finfo(cd).bits // 8

    # ---- feature padding: lane-dense, tile-aligned everywhere (items 1 + 5) -
    Fin_p = _round_up(Fin, feat_align)
    mid_p = _round_up(mid, feat_align)
    out_p = _round_up(out_dim, feat_align)

    # ---- propagation operand: L, or the stacked T_k(L) matrices (item 6) ----
    Lf = graph_L.astype(jnp.float32)
    if use_cheby_stack is None:
        use_cheby_stack = (K > 1 and
                           (K - 1) * V * V * cd_nbytes <= cheby_stack_budget_bytes)
    use_cheby_stack = bool(use_cheby_stack) and K > 1
    if use_cheby_stack:
        prop = jnp.concatenate(chebyshev_matrices(Lf, K), axis=0).astype(cd)
    else:
        prop = Lf.astype(cd)

    # ---- weights: torch fc.weight[o, f*K + k] -> w[k*F_p + f, o], zero-padded
    # (torch's graph_conv_cheby flattens (Fin, K) as column f*K + k; the kernel
    #  concatenates Chebyshev terms as column k*F_p + f, so the weight is
    #  rearranged + padded here, once, in the wrapper.)
    def cheb_weight(w_torch, fin, fin_p, odim, odim_p):
        w = w_torch.reshape(odim, fin, K).transpose(2, 1, 0)       # (K, fin, o)
        wp = jnp.zeros((K, fin_p, odim_p), jnp.float32)
        wp = wp.at[:, :fin, :odim].set(w)
        return wp.reshape(K * fin_p, odim_p)

    def pad_vec(v, n_p):
        return jnp.zeros((n_p,), jnp.float32).at[:v.shape[0]].set(
            v.astype(jnp.float32))

    w1cat = cheb_weight(params["fc1_w"], Fin, Fin_p, mid, mid_p)
    w2cat = cheb_weight(params["fc2_w"], mid, mid_p, out_dim, out_p)

    if fuse_shortcut is None:
        # Fusing the shortcut into the k=0 block of w1 is free only while the
        # padded contraction fits one MXU pass (256 on v6e/v7x) (item 10).
        fuse_shortcut = (K * Fin_p) <= 256
    fuse_shortcut = bool(fuse_shortcut)

    scw_p = jnp.zeros((Fin_p, out_p), jnp.float32)
    scw_p = scw_p.at[:Fin, :out_dim].set(params["sc_w"].T.astype(jnp.float32))

    if fuse_shortcut:
        sc_blk = jnp.zeros((K * Fin_p, out_p), jnp.float32).at[:Fin_p, :].set(scw_p)
        w1 = jnp.concatenate([w1cat, sc_blk], axis=1).astype(cd)
        b1 = jnp.concatenate([pad_vec(params["fc1_b"], mid_p),
                              pad_vec(params["sc_b"], out_p)]).reshape(1, -1)
        sc_args = []
    else:
        w1 = w1cat.astype(cd)
        b1 = pad_vec(params["fc1_b"], mid_p).reshape(1, mid_p)
        sc_args = [scw_p.astype(cd),
                   pad_vec(params["sc_b"], out_p).reshape(1, out_p)]

    w2 = w2cat.astype(cd)
    b2 = pad_vec(params["fc2_b"], out_p).reshape(1, out_p)
    g2 = pad_vec(params["g2"], mid_p).reshape(1, mid_p)
    be2 = pad_vec(params["be2"], mid_p).reshape(1, mid_p)
    g3 = pad_vec(params["g3"], out_p).reshape(1, out_p)
    be3 = pad_vec(params["be3"], out_p).reshape(1, out_p)

    invariants = [prop, w1, b1] + sc_args + [g2, be2, w2, b2, g3, be3]
    inv_bytes = sum(int(a.size) * a.dtype.itemsize for a in invariants)

    # Rough per-sample live-activation footprint (f32-dominated).
    act_bytes = 4 * V * (K * (Fin_p + mid_p) + 4 * (mid_p + out_p))
    if use_cheby_stack:
        act_bytes += 4 * (K - 1) * V * max(Fin_p, mid_p)

    # ---- batch tile: biggest tile within a v7x-safe VMEM budget (items 2/3) -
    if batch_tile is not None:
        TB = int(batch_tile)
    else:
        TB = max(1, -(-B // max(1, int(min_grid_steps))))
        budget = 48 << 20                       # headroom inside v7x's 64 MiB
        while TB > 1 and (inv_bytes
                          + 2 * TB * V * (Fin_p * cd_nbytes + 4 * out_p)
                          + 2 * act_bytes) > budget:
            TB = max(1, TB // 2)
    NB = -(-B // TB)
    B_pad = NB * TB

    tile_bytes = 2 * TB * V * (Fin_p * cd_nbytes + 4 * out_p)
    est = ((1 if single_buffer_invariants else 2) * inv_bytes
           + tile_bytes + 2 * act_bytes)
    vmem_limit = int(min(64 << 20, max(32 << 20, est)))

    # ---- input: pad batch + features, cast once to bf16 (no transposes) -----
    xin = jnp.pad(x.astype(cd), ((0, B_pad - B), (0, 0), (0, Fin_p - Fin)))

    kernel = functools.partial(
        gcn_resblock_kernel, K=K, mid_p=mid_p, out_p=out_p,
        mid_true=mid, out_true=out_dim,
        use_stack=use_cheby_stack, fuse_shortcut=fuse_shortcut)

    def _inv_spec(arr, buffered_one):
        n = arr.ndim
        kwargs = {"pipeline_mode": pl.Buffered(1)} if buffered_one else {}
        return pl.BlockSpec(arr.shape, lambda i, _n=n: (0,) * _n, **kwargs)

    def _run(buffered_one):
        call = pl.pallas_call(
            kernel,
            out_shape=jax.ShapeDtypeStruct((B_pad, V, out_p), jnp.float32),
            grid_spec=pltpu.PrefetchScalarGridSpec(
                num_scalar_prefetch=0,
                grid=(NB,),
                in_specs=[pl.BlockSpec((TB, V, Fin_p), lambda i: (i, 0, 0))]
                         + [_inv_spec(a, buffered_one) for a in invariants],
                out_specs=pl.BlockSpec((TB, V, out_p), lambda i: (i, 0, 0)),
            ),
            compiler_params=pltpu.CompilerParams(
                dimension_semantics=("parallel",),
                vmem_limit_bytes=vmem_limit),
        )
        return call(xin, *invariants)

    if single_buffer_invariants:
        try:
            out_full = jax.block_until_ready(_run(True))
        except Exception:
            # pl.Buffered(1) unsupported on this jax version -> default pipelining.
            out_full = _run(False)
    else:
        out_full = _run(False)

    return out_full[:B, :, :out_dim]


def ref_forward(x, L, p, K, compute_dtype=jnp.float32, use_stack=False):
    """Pure-JAX reference mirroring the PyTorch forward (eval mode).

    compute_dtype=float32 reproduces the torch semantics exactly;
    compute_dtype=bfloat16 mirrors the kernel's bf16-operand / f32-accumulate
    matmuls (use_stack selects the precomputed-T_k path vs the recursion,
    matching the kernel config under test).
    """
    cd = compute_dtype
    Lf = L.astype(jnp.float32)
    Lc = Lf.astype(cd)
    B, V, _ = x.shape
    Tmats = [T.astype(cd) for T in chebyshev_matrices(Lf, K)]

    def mm(M, t):
        return jnp.einsum("uv,bvf->buf", M, t.astype(cd),
                          preferred_element_type=jnp.float32)

    def cheby(inp, W, b):                       # W: torch layout (odim, F*K)
        F_ = inp.shape[-1]
        t0 = inp.astype(cd)
        terms = [t0.astype(cd)]
        if K > 1:
            if use_stack:
                for Tk in Tmats:
                    terms.append(mm(Tk, t0).astype(cd))
            else:
                t1 = mm(Lc, t0)
                terms.append(t1.astype(cd))
                tp = t0
                for _ in range(2, K):
                    t2 = 2.0 * mm(Lc, t1) - tp
                    terms.append(t2.astype(cd))
                    tp, t1 = t1, t2
        t = jnp.stack(terms, axis=-1).reshape(B, V, F_ * K)    # col = f*K + k
        return (jnp.einsum("bvi,oi->bvo", t.astype(cd), W.astype(cd),
                           preferred_element_type=jnp.float32) + b)

    def ln(z, g, be, eps=1e-6):
        mu = z.mean(-1, keepdims=True)
        var = ((z - mu) ** 2).mean(-1, keepdims=True)
        return (z - mu) / jnp.sqrt(var + eps) * g + be

    # relu(norm1(x)) in the torch forward is dead code (overwritten before use).
    h1 = cheby(x, p["fc1_w"], p["fc1_b"])
    h1 = jnp.maximum(ln(h1, p["g2"], p["be2"]), 0.0)
    h2 = cheby(h1, p["fc2_w"], p["fc2_b"])
    sc = (jnp.einsum("bvf,of->bvo", x.astype(cd), p["sc_w"].astype(cd),
                     preferred_element_type=jnp.float32) + p["sc_b"])
    return ln(h2 + sc, p["g3"], p["be3"])


if __name__ == "__main__":
    # Small shapes consistent with the module (norm2/fc2 require mid == out).
    B, V = 2, 16
    in_dim, mid_dim, out_dim, graph_k = 8, 16, 16, 3

    key = jax.random.PRNGKey(0)
    ks = jax.random.split(key, 12)

    x = jax.random.normal(ks[0], (B, V, in_dim), dtype=jnp.float32)

    # Deterministic symmetric "graph Laplacian", rescaled for a stable recursion.
    A = jax.random.normal(ks[1], (V, V), dtype=jnp.float32)
    graph_L = (A + A.T) * 0.5
    graph_L = graph_L / (jnp.max(jnp.abs(graph_L)) * V * 0.25)

    params = {
        # torch layouts
        "fc1_w": 0.1 * jax.random.normal(ks[2], (mid_dim, in_dim * graph_k), jnp.float32),
        "fc1_b": 0.1 * jax.random.normal(ks[3], (mid_dim,), jnp.float32),
        "fc2_w": 0.1 * jax.random.normal(ks[4], (out_dim, mid_dim * graph_k), jnp.float32),
        "fc2_b": 0.1 * jax.random.normal(ks[5], (out_dim,), jnp.float32),
        "sc_w": 0.1 * jax.random.normal(ks[6], (out_dim, in_dim), jnp.float32),
        "sc_b": 0.1 * jax.random.normal(ks[7], (out_dim,), jnp.float32),
        "g2": 1.0 + 0.1 * jax.random.normal(ks[8], (mid_dim,), jnp.float32),
        "be2": 0.1 * jax.random.normal(ks[9], (mid_dim,), jnp.float32),
        "g3": 1.0 + 0.1 * jax.random.normal(ks[10], (out_dim,), jnp.float32),
        "be3": 0.1 * jax.random.normal(ks[11], (out_dim,), jnp.float32),
    }

    ref_f32 = ref_forward(x, graph_L, params, graph_k, compute_dtype=jnp.float32)

    # Config A (defaults): 128-aligned feature padding, precomputed Chebyshev
    # stack, single grid step, single-buffered invariants, unfused shortcut
    # (K*Fin_p > 256 after padding).
    out_a = jax.block_until_ready(gcn_resblock(x, graph_L, params, graph_k))
    ref_a = ref_forward(x, graph_L, params, graph_k,
                        compute_dtype=jnp.bfloat16, use_stack=True)
    np.testing.assert_allclose(np.asarray(out_a), np.asarray(ref_a),
                               rtol=5e-3, atol=5e-3)
    np.testing.assert_allclose(np.asarray(out_a), np.asarray(ref_f32),
                               rtol=1e-1, atol=1e-1)

    # Config B: in-kernel Chebyshev recursion, fused shortcut, minimal feature
    # padding, one sample per grid step (multi-step "parallel" grid), default
    # double-buffered invariants -- exercises the alternative code paths.
    out_b = jax.block_until_ready(gcn_resblock(
        x, graph_L, params, graph_k, feat_align=8, batch_tile=1,
        use_cheby_stack=False, fuse_shortcut=True,
        single_buffer_invariants=False))
    ref_b = ref_forward(x, graph_L, params, graph_k,
                        compute_dtype=jnp.bfloat16, use_stack=False)
    np.testing.assert_allclose(np.asarray(out_b), np.asarray(ref_b),
                               rtol=5e-3, atol=5e-3)
    np.testing.assert_allclose(np.asarray(out_b), np.asarray(ref_f32),
                               rtol=1e-1, atol=1e-1)

    print("KERNEL_OK")
</pallas_src>

<mosaic_0001>
module attributes {stable_mosaic.version = 11 : i64} {
  func.func @gcn_resblock_kernel(%arg0: i32, %arg1: memref<2x16x128xbf16, #tpu.memory_space<vmem>>, %arg2: memref<32x16xbf16, #tpu.memory_space<vmem>>, %arg3: memref<384x128xbf16, #tpu.memory_space<vmem>>, %arg4: memref<1x128xf32, #tpu.memory_space<vmem>>, %arg5: memref<128x128xbf16, #tpu.memory_space<vmem>>, %arg6: memref<1x128xf32, #tpu.memory_space<vmem>>, %arg7: memref<1x128xf32, #tpu.memory_space<vmem>>, %arg8: memref<1x128xf32, #tpu.memory_space<vmem>>, %arg9: memref<384x128xbf16, #tpu.memory_space<vmem>>, %arg10: memref<1x128xf32, #tpu.memory_space<vmem>>, %arg11: memref<1x128xf32, #tpu.memory_space<vmem>>, %arg12: memref<1x128xf32, #tpu.memory_space<vmem>>, %arg13: memref<2x16x128xf32, #tpu.memory_space<vmem>>) attributes {dimension_semantics = [#tpu.dimension_semantics<parallel>], iteration_bounds = array<i64: 1>, scalar_prefetch = 0 : i64, scratch_operands = 0 : i64, tpu.core_type = #tpu.core_type<tc>, window_params = [{transform_indices = @transform_0, window_bounds = array<i64: 2, 16, 128>}, {pipeline_mode = #tpu.pipeline_mode<synchronous>, transform_indices = @transform_1, window_bounds = array<i64: 32, 16>}, {pipeline_mode = #tpu.pipeline_mode<synchronous>, transform_indices = @transform_2, window_bounds = array<i64: 384, 128>}, {pipeline_mode = #tpu.pipeline_mode<synchronous>, transform_indices = @transform_3, window_bounds = array<i64: 1, 128>}, {pipeline_mode = #tpu.pipeline_mode<synchronous>, transform_indices = @transform_4, window_bounds = array<i64: 128, 128>}, {pipeline_mode = #tpu.pipeline_mode<synchronous>, transform_indices = @transform_5, window_bounds = array<i64: 1, 128>}, {pipeline_mode = #tpu.pipeline_mode<synchronous>, transform_indices = @transform_6, window_bounds = array<i64: 1, 128>}, {pipeline_mode = #tpu.pipeline_mode<synchronous>, transform_indices = @transform_7, window_bounds = array<i64: 1, 128>}, {pipeline_mode = #tpu.pipeline_mode<synchronous>, transform_indices = @transform_8, window_bounds = array<i64: 384, 128>}, {pipeline_mode = #tpu.pipeline_mode<synchronous>, transform_indices = @transform_9, window_bounds = array<i64: 1, 128>}, {pipeline_mode = #tpu.pipeline_mode<synchronous>, transform_indices = @transform_10, window_bounds = array<i64: 1, 128>}, {pipeline_mode = #tpu.pipeline_mode<synchronous>, transform_indices = @transform_11, window_bounds = array<i64: 1, 128>}, {transform_indices = @transform_12, window_bounds = array<i64: 2, 16, 128>}]} {
    %c0 = arith.constant 0 : index
    %c0_0 = arith.constant 0 : index
    %0 = vector.load %arg2[%c0, %c0_0] : memref<32x16xbf16, #tpu.memory_space<vmem>>, vector<32x16xbf16>
    %c0_1 = arith.constant 0 : index
    %c0_2 = arith.constant 0 : index
    %1 = vector.load %arg3[%c0_1, %c0_2] : memref<384x128xbf16, #tpu.memory_space<vmem>>, vector<384x128xbf16>
    %c0_3 = arith.constant 0 : index
    %c0_4 = arith.constant 0 : index
    %2 = vector.load %arg4[%c0_3, %c0_4] : memref<1x128xf32, #tpu.memory_space<vmem>>, vector<1x128xf32>
    %c0_5 = arith.constant 0 : index
    %c0_6 = arith.constant 0 : index
    %3 = vector.load %arg9[%c0_5, %c0_6] : memref<384x128xbf16, #tpu.memory_space<vmem>>, vector<384x128xbf16>
    %c0_7 = arith.constant 0 : index
    %c0_8 = arith.constant 0 : index
    %4 = vector.load %arg10[%c0_7, %c0_8] : memref<1x128xf32, #tpu.memory_space<vmem>>, vector<1x128xf32>
    %c0_9 = arith.constant 0 : index
    %c0_10 = arith.constant 0 : index
    %5 = vector.load %arg7[%c0_9, %c0_10] : memref<1x128xf32, #tpu.memory_space<vmem>>, vector<1x128xf32>
    %c0_11 = arith.constant 0 : index
    %c0_12 = arith.constant 0 : index
    %6 = vector.load %arg8[%c0_11, %c0_12] : memref<1x128xf32, #tpu.memory_space<vmem>>, vector<1x128xf32>
    %c0_13 = arith.constant 0 : index
    %c0_14 = arith.constant 0 : index
    %7 = vector.load %arg11[%c0_13, %c0_14] : memref<1x128xf32, #tpu.memory_space<vmem>>, vector<1x128xf32>
    %c0_15 = arith.constant 0 : index
    %c0_16 = arith.constant 0 : index
    %8 = vector.load %arg12[%c0_15, %c0_16] : memref<1x128xf32, #tpu.memory_space<vmem>>, vector<1x128xf32>
    %c0_17 = arith.constant 0 : index
    %c0_18 = arith.constant 0 : index
    %9 = vector.load %arg5[%c0_17, %c0_18] : memref<128x128xbf16, #tpu.memory_space<vmem>>, vector<128x128xbf16>
    %c0_19 = arith.constant 0 : index
    %c0_20 = arith.constant 0 : index
    %10 = vector.load %arg6[%c0_19, %c0_20] : memref<1x128xf32, #tpu.memory_space<vmem>>, vector<1x128xf32>
    %c0_21 = arith.constant 0 : index
    %c0_22 = arith.constant 0 : index
    %c0_23 = arith.constant 0 : index
    %11 = vector.load %arg1[%c0_21, %c0_22, %c0_23] : memref<2x16x128xbf16, #tpu.memory_space<vmem>>, vector<1x16x128xbf16>
    %12 = vector.shape_cast %11 : vector<1x16x128xbf16> to vector<16x128xbf16>
    %cst = arith.constant dense<0.000000e+00> : vector<32x128xf32>
    %13 = tpu.matmul %0, %12, %cst {dimension_numbers = #tpu.dot_dimension_numbers<[1], [0], [0], [1], [0, 0, 1, 1], [], []>} : vector<32x16xbf16>, vector<16x128xbf16>, vector<32x128xf32> -> vector<32x128xf32>
    %14 = vector.extract_strided_slice %13 {offsets = [0, 0], sizes = [16, 128], strides = [1, 1]} : vector<32x128xf32> to vector<16x128xf32>
    %15 = arith.truncf %14 : vector<16x128xf32> to vector<16x128xbf16>
    %16 = vector.extract_strided_slice %13 {offsets = [16, 0], sizes = [16, 128], strides = [1, 1]} : vector<32x128xf32> to vector<16x128xf32>
    %17 = arith.truncf %16 : vector<16x128xf32> to vector<16x128xbf16>
    %18 = tpu.concatenate %12, %15, %17 in 1 : vector<16x128xbf16>, vector<16x128xbf16>, vector<16x128xbf16> -> vector<16x384xbf16>
    %cst_24 = arith.constant dense<0.000000e+00> : vector<16x128xf32>
    %19 = tpu.matmul %18, %1, %cst_24 {dimension_numbers = #tpu.dot_dimension_numbers<[1], [0], [0], [1], [0, 0, 1, 1], [], []>} : vector<16x384xbf16>, vector<384x128xbf16>, vector<16x128xf32> -> vector<16x128xf32>
    %20 = vector.broadcast %2 : vector<1x128xf32> to vector<16x128xf32>
    %21 = arith.addf %19, %20 : vector<16x128xf32>
    %cst_25 = arith.constant dense<0.000000e+00> : vector<16x128xf32>
    %22 = tpu.matmul %12, %9, %cst_25 {dimension_numbers = #tpu.dot_dimension_numbers<[1], [0], [0], [1], [0, 0, 1, 1], [], []>} : vector<16x128xbf16>, vector<128x128xbf16>, vector<16x128xf32> -> vector<16x128xf32>
    %23 = vector.broadcast %10 : vector<1x128xf32> to vector<16x128xf32>
    %24 = arith.addf %22, %23 : vector<16x128xf32>
    %cst_26 = arith.constant dense<0.000000e+00> : vector<16xf32>
    %25 = vector.multi_reduction <add>, %21, %cst_26 [1] : vector<16x128xf32> to vector<16xf32>
    %26 = vector.shape_cast %25 : vector<16xf32> to vector<16x1xf32>
    %cst_27 = arith.constant 6.250000e-02 : f32
    %27 = vector.broadcast %cst_27 : f32 to vector<16x1xf32>
    %28 = arith.mulf %26, %27 : vector<16x1xf32>
    %29 = arith.mulf %21, %21 : vector<16x128xf32>
    %cst_28 = arith.constant dense<0.000000e+00> : vector<16xf32>
    %30 = vector.multi_reduction <add>, %29, %cst_28 [1] : vector<16x128xf32> to vector<16xf32>
    %31 = vector.shape_cast %30 : vector<16xf32> to vector<16x1xf32>
    %cst_29 = arith.constant 6.250000e-02 : f32
    %32 = vector.broadcast %cst_29 : f32 to vector<16x1xf32>
    %33 = arith.mulf %31, %32 : vector<16x1xf32>
    %34 = arith.mulf %28, %28 : vector<16x1xf32>
    %35 = arith.subf %33, %34 : vector<16x1xf32>
    %36 = vector.broadcast %28 : vector<16x1xf32> to vector<16x128xf32>
    %37 = arith.subf %21, %36 : vector<16x128xf32>
    %cst_30 = arith.constant 9.99999997E-7 : f32
    %38 = vector.broadcast %cst_30 : f32 to vector<16x1xf32>
    %39 = arith.addf %35, %38 : vector<16x1xf32>
    %40 = math.rsqrt %39 : vector<16x1xf32>
    %41 = vector.broadcast %40 : vector<16x1xf32> to vector<16x128xf32>
    %42 = arith.mulf %37, %41 : vector<16x128xf32>
    %43 = vector.broadcast %5 : vector<1x128xf32> to vector<16x128xf32>
    %44 = arith.mulf %42, %43 : vector<16x128xf32>
    %45 = vector.broadcast %6 : vector<1x128xf32> to vector<16x128xf32>
    %46 = arith.addf %44, %45 : vector<16x128xf32>
    %cst_31 = arith.constant 0.000000e+00 : f32
    %47 = vector.broadcast %cst_31 : f32 to vector<16x128xf32>
    %48 = arith.maximumf %46, %47 : vector<16x128xf32>
    %49 = arith.truncf %48 : vector<16x128xf32> to vector<16x128xbf16>
    %cst_32 = arith.constant dense<0.000000e+00> : vector<32x128xf32>
    %50 = tpu.matmul %0, %49, %cst_32 {dimension_numbers = #tpu.dot_dimension_numbers<[1], [0], [0], [1], [0, 0, 1, 1], [], []>} : vector<32x16xbf16>, vector<16x128xbf16>, vector<32x128xf32> -> vector<32x128xf32>
    %51 = vector.extract_strided_slice %50 {offsets = [0, 0], sizes = [16, 128], strides = [1, 1]} : vector<32x128xf32> to vector<16x128xf32>
    %52 = arith.truncf %51 : vector<16x128xf32> to vector<16x128xbf16>
    %53 = vector.extract_strided_slice %50 {offsets = [16, 0], sizes = [16, 128], strides = [1, 1]} : vector<32x128xf32> to vector<16x128xf32>
    %54 = arith.truncf %53 : vector<16x128xf32> to vector<16x128xbf16>
    %55 = tpu.concatenate %49, %52, %54 in 1 : vector<16x128xbf16>, vector<16x128xbf16>, vector<16x128xbf16> -> vector<16x384xbf16>
    %cst_33 = arith.constant dense<0.000000e+00> : vector<16x128xf32>
    %56 = tpu.matmul %55, %3, %cst_33 {dimension_numbers = #tpu.dot_dimension_numbers<[1], [0], [0], [1], [0, 0, 1, 1], [], []>} : vector<16x384xbf16>, vector<384x128xbf16>, vector<16x128xf32> -> vector<16x128xf32>
    %57 = vector.broadcast %4 : vector<1x128xf32> to vector<16x128xf32>
    %58 = arith.addf %56, %57 : vector<16x128xf32>
    %59 = arith.addf %58, %24 : vector<16x128xf32>
    %cst_34 = arith.constant dense<0.000000e+00> : vector<16xf32>
    %60 = vector.multi_reduction <add>, %59, %cst_34 [1] : vector<16x128xf32> to vector<16xf32>
    %61 = vector.shape_cast %60 : vector<16xf32> to vector<16x1xf32>
    %cst_35 = arith.constant 6.250000e-02 : f32
    %62 = vector.broadcast %cst_35 : f32 to vector<16x1xf32>
    %63 = arith.mulf %61, %62 : vector<16x1xf32>
    %64 = arith.mulf %59, %59 : vector<16x128xf32>
    %cst_36 = arith.constant dense<0.000000e+00> : vector<16xf32>
    %65 = vector.multi_reduction <add>, %64, %cst_36 [1] : vector<16x128xf32> to vector<16xf32>
    %66 = vector.shape_cast %65 : vector<16xf32> to vector<16x1xf32>
    %cst_37 = arith.constant 6.250000e-02 : f32
    %67 = vector.broadcast %cst_37 : f32 to vector<16x1xf32>
    %68 = arith.mulf %66, %67 : vector<16x1xf32>
    %69 = arith.mulf %63, %63 : vector<16x1xf32>
    %70 = arith.subf %68, %69 : vector<16x1xf32>
    %71 = vector.broadcast %63 : vector<16x1xf32> to vector<16x128xf32>
    %72 = arith.subf %59, %71 : vector<16x128xf32>
    %cst_38 = arith.constant 9.99999997E-7 : f32
    %73 = vector.broadcast %cst_38 : f32 to vector<16x1xf32>
    %74 = arith.addf %70, %73 : vector<16x1xf32>
    %75 = math.rsqrt %74 : vector<16x1xf32>
    %76 = vector.broadcast %75 : vector<16x1xf32> to vector<16x128xf32>
    %77 = arith.mulf %72, %76 : vector<16x128xf32>
    %78 = vector.broadcast %7 : vector<1x128xf32> to vector<16x128xf32>
    %79 = arith.mulf %77, %78 : vector<16x128xf32>
    %80 = vector.broadcast %8 : vector<1x128xf32> to vector<16x128xf32>
    %81 = arith.addf %79, %80 : vector<16x128xf32>
    %c0_39 = arith.constant 0 : index
    %c0_40 = arith.constant 0 : index
    %c0_41 = arith.constant 0 : index
    %82 = vector.load %arg13[%c0_39, %c0_40, %c0_41] : memref<2x16x128xf32, #tpu.memory_space<vmem>>, vector<1x16x128xf32>
    %83 = vector.shape_cast %82 : vector<1x16x128xf32> to vector<16x128xf32>
    %84 = vector.shape_cast %81 : vector<16x128xf32> to vector<1x16x128xf32>
    tpu.vector_store %arg13[%c0_39, %c0_40, %c0_41], %84 {strides = array<i32>} : memref<2x16x128xf32, #tpu.memory_space<vmem>>, vector<1x16x128xf32>,
    %c1 = arith.constant 1 : index
    %c0_42 = arith.constant 0 : index
    %c0_43 = arith.constant 0 : index
    %85 = vector.load %arg1[%c1, %c0_42, %c0_43] : memref<2x16x128xbf16, #tpu.memory_space<vmem>>, vector<1x16x128xbf16>
    %86 = vector.shape_cast %85 : vector<1x16x128xbf16> to vector<16x128xbf16>
    %cst_44 = arith.constant dense<0.000000e+00> : vector<32x128xf32>
    %87 = tpu.matmul %0, %86, %cst_44 {dimension_numbers = #tpu.dot_dimension_numbers<[1], [0], [0], [1], [0, 0, 1, 1], [], []>} : vector<32x16xbf16>, vector<16x128xbf16>, vector<32x128xf32> -> vector<32x128xf32>
    %88 = vector.extract_strided_slice %87 {offsets = [0, 0], sizes = [16, 128], strides = [1, 1]} : vector<32x128xf32> to vector<16x128xf32>
    %89 = arith.truncf %88 : vector<16x128xf32> to vector<16x128xbf16>
    %90 = vector.extract_strided_slice %87 {offsets = [16, 0], sizes = [16, 128], strides = [1, 1]} : vector<32x128xf32> to vector<16x128xf32>
    %91 = arith.truncf %90 : vector<16x128xf32> to vector<16x128xbf16>
    %92 = tpu.concatenate %86, %89, %91 in 1 : vector<16x128xbf16>, vector<16x128xbf16>, vector<16x128xbf16> -> vector<16x384xbf16>
    %cst_45 = arith.constant dense<0.000000e+00> : vector<16x128xf32>
    %93 = tpu.matmul %92, %1, %cst_45 {dimension_numbers = #tpu.dot_dimension_numbers<[1], [0], [0], [1], [0, 0, 1, 1], [], []>} : vector<16x384xbf16>, vector<384x128xbf16>, vector<16x128xf32> -> vector<16x128xf32>
    %94 = vector.broadcast %2 : vector<1x128xf32> to vector<16x128xf32>
    %95 = arith.addf %93, %94 : vector<16x128xf32>
    %cst_46 = arith.constant dense<0.000000e+00> : vector<16x128xf32>
    %96 = tpu.matmul %86, %9, %cst_46 {dimension_numbers = #tpu.dot_dimension_numbers<[1], [0], [0], [1], [0, 0, 1, 1], [], []>} : vector<16x128xbf16>, vector<128x128xbf16>, vector<16x128xf32> -> vector<16x128xf32>
    %97 = vector.broadcast %10 : vector<1x128xf32> to vector<16x128xf32>
    %98 = arith.addf %96, %97 : vector<16x128xf32>
    %cst_47 = arith.constant dense<0.000000e+00> : vector<16xf32>
    %99 = vector.multi_reduction <add>, %95, %cst_47 [1] : vector<16x128xf32> to vector<16xf32>
    %100 = vector.shape_cast %99 : vector<16xf32> to vector<16x1xf32>
    %cst_48 = arith.constant 6.250000e-02 : f32
    %101 = vector.broadcast %cst_48 : f32 to vector<16x1xf32>
    %102 = arith.mulf %100, %101 : vector<16x1xf32>
    %103 = arith.mulf %95, %95 : vector<16x128xf32>
    %cst_49 = arith.constant dense<0.000000e+00> : vector<16xf32>
    %104 = vector.multi_reduction <add>, %103, %cst_49 [1] : vector<16x128xf32> to vector<16xf32>
    %105 = vector.shape_cast %104 : vector<16xf32> to vector<16x1xf32>
    %cst_50 = arith.constant 6.250000e-02 : f32
    %106 = vector.broadcast %cst_50 : f32 to vector<16x1xf32>
    %107 = arith.mulf %105, %106 : vector<16x1xf32>
    %108 = arith.mulf %102, %102 : vector<16x1xf32>
    %109 = arith.subf %107, %108 : vector<16x1xf32>
    %110 = vector.broadcast %102 : vector<16x1xf32> to vector<16x128xf32>
    %111 = arith.subf %95, %110 : vector<16x128xf32>
    %cst_51 = arith.constant 9.99999997E-7 : f32
    %112 = vector.broadcast %cst_51 : f32 to vector<16x1xf32>
    %113 = arith.addf %109, %112 : vector<16x1xf32>
    %114 = math.rsqrt %113 : vector<16x1xf32>
    %115 = vector.broadcast %114 : vector<16x1xf32> to vector<16x128xf32>
    %116 = arith.mulf %111, %115 : vector<16x128xf32>
    %117 = vector.broadcast %5 : vector<1x128xf32> to vector<16x128xf32>
    %118 = arith.mulf %116, %117 : vector<16x128xf32>
    %119 = vector.broadcast %6 : vector<1x128xf32> to vector<16x128xf32>
    %120 = arith.addf %118, %119 : vector<16x128xf32>
    %cst_52 = arith.constant 0.000000e+00 : f32
    %121 = vector.broadcast %cst_52 : f32 to vector<16x128xf32>
    %122 = arith.maximumf %120, %121 : vector<16x128xf32>
    %123 = arith.truncf %122 : vector<16x128xf32> to vector<16x128xbf16>
    %cst_53 = arith.constant dense<0.000000e+00> : vector<32x128xf32>
    %124 = tpu.matmul %0, %123, %cst_53 {dimension_numbers = #tpu.dot_dimension_numbers<[1], [0], [0], [1], [0, 0, 1, 1], [], []>} : vector<32x16xbf16>, vector<16x128xbf16>, vector<32x128xf32> -> vector<32x128xf32>
    %125 = vector.extract_strided_slice %124 {offsets = [0, 0], sizes = [16, 128], strides = [1, 1]} : vector<32x128xf32> to vector<16x128xf32>
    %126 = arith.truncf %125 : vector<16x128xf32> to vector<16x128xbf16>
    %127 = vector.extract_strided_slice %124 {offsets = [16, 0], sizes = [16, 128], strides = [1, 1]} : vector<32x128xf32> to vector<16x128xf32>
    %128 = arith.truncf %127 : vector<16x128xf32> to vector<16x128xbf16>
    %129 = tpu.concatenate %123, %126, %128 in 1 : vector<16x128xbf16>, vector<16x128xbf16>, vector<16x128xbf16> -> vector<16x384xbf16>
    %cst_54 = arith.constant dense<0.000000e+00> : vector<16x128xf32>
    %130 = tpu.matmul %129, %3, %cst_54 {dimension_numbers = #tpu.dot_dimension_numbers<[1], [0], [0], [1], [0, 0, 1, 1], [], []>} : vector<16x384xbf16>, vector<384x128xbf16>, vector<16x128xf32> -> vector<16x128xf32>
    %131 = vector.broadcast %4 : vector<1x128xf32> to vector<16x128xf32>
    %132 = arith.addf %130, %131 : vector<16x128xf32>
    %133 = arith.addf %132, %98 : vector<16x128xf32>
    %cst_55 = arith.constant dense<0.000000e+00> : vector<16xf32>
    %134 = vector.multi_reduction <add>, %133, %cst_55 [1] : vector<16x128xf32> to vector<16xf32>
    %135 = vector.shape_cast %134 : vector<16xf32> to vector<16x1xf32>
    %cst_56 = arith.constant 6.250000e-02 : f32
    %136 = vector.broadcast %cst_56 : f32 to vector<16x1xf32>
    %137 = arith.mulf %135, %136 : vector<16x1xf32>
    %138 = arith.mulf %133, %133 : vector<16x128xf32>
    %cst_57 = arith.constant dense<0.000000e+00> : vector<16xf32>
    %139 = vector.multi_reduction <add>, %138, %cst_57 [1] : vector<16x128xf32> to vector<16xf32>
    %140 = vector.shape_cast %139 : vector<16xf32> to vector<16x1xf32>
    %cst_58 = arith.constant 6.250000e-02 : f32
    %141 = vector.broadcast %cst_58 : f32 to vector<16x1xf32>
    %142 = arith.mulf %140, %141 : vector<16x1xf32>
    %143 = arith.mulf %137, %137 : vector<16x1xf32>
    %144 = arith.subf %142, %143 : vector<16x1xf32>
    %145 = vector.broadcast %137 : vector<16x1xf32> to vector<16x128xf32>
    %146 = arith.subf %133, %145 : vector<16x128xf32>
    %cst_59 = arith.constant 9.99999997E-7 : f32
    %147 = vector.broadcast %cst_59 : f32 to vector<16x1xf32>
    %148 = arith.addf %144, %147 : vector<16x1xf32>
    %149 = math.rsqrt %148 : vector<16x1xf32>
    %150 = vector.broadcast %149 : vector<16x1xf32> to vector<16x128xf32>
    %151 = arith.mulf %146, %150 : vector<16x128xf32>
    %152 = vector.broadcast %7 : vector<1x128xf32> to vector<16x128xf32>
    %153 = arith.mulf %151, %152 : vector<16x128xf32>
    %154 = vector.broadcast %8 : vector<1x128xf32> to vector<16x128xf32>
    %155 = arith.addf %153, %154 : vector<16x128xf32>
    %c1_60 = arith.constant 1 : index
    %c0_61 = arith.constant 0 : index
    %c0_62 = arith.constant 0 : index
    %156 = vector.load %arg13[%c1_60, %c0_61, %c0_62] : memref<2x16x128xf32, #tpu.memory_space<vmem>>, vector<1x16x128xf32>
    %157 = vector.shape_cast %156 : vector<1x16x128xf32> to vector<16x128xf32>
    %158 = vector.shape_cast %155 : vector<16x128xf32> to vector<1x16x128xf32>
    tpu.vector_store %arg13[%c1_60, %c0_61, %c0_62], %158 {strides = array<i32>} : memref<2x16x128xf32, #tpu.memory_space<vmem>>, vector<1x16x128xf32>,
    return
  }
  func.func @transform_0(%arg0: i32) -> (i32, i32, i32) {
    %c0_i32 = arith.constant 0 : i32
    %c0_i32_0 = arith.constant 0 : i32
    %c0_i32_1 = arith.constant 0 : i32
    return %arg0, %c0_i32, %c0_i32_0 : i32, i32, i32
  }
  func.func @transform_1(%arg0: i32) -> (i32, i32) {
    %c0_i32 = arith.constant 0 : i32
    %c0_i32_0 = arith.constant 0 : i32
    %c0_i32_1 = arith.constant 0 : i32
    return %c0_i32, %c0_i32_0 : i32, i32
  }
  func.func @transform_2(%arg0: i32) -> (i32, i32) {
    %c0_i32 = arith.constant 0 : i32
    %c0_i32_0 = arith.constant 0 : i32
    %c0_i32_1 = arith.constant 0 : i32
    return %c0_i32, %c0_i32_0 : i32, i32
  }
  func.func @transform_3(%arg0: i32) -> (i32, i32) {
    %c0_i32 = arith.constant 0 : i32
    %c0_i32_0 = arith.constant 0 : i32
    %c0_i32_1 = arith.constant 0 : i32
    return %c0_i32, %c0_i32_0 : i32, i32
  }
  func.func @transform_4(%arg0: i32) -> (i32, i32) {
    %c0_i32 = arith.constant 0 : i32
    %c0_i32_0 = arith.constant 0 : i32
    %c0_i32_1 = arith.constant 0 : i32
    return %c0_i32, %c0_i32_0 : i32, i32
  }
  func.func @transform_5(%arg0: i32) -> (i32, i32) {
    %c0_i32 = arith.constant 0 : i32
    %c0_i32_0 = arith.constant 0 : i32
    %c0_i32_1 = arith.constant 0 : i32
    return %c0_i32, %c0_i32_0 : i32, i32
  }
  func.func @transform_6(%arg0: i32) -> (i32, i32) {
    %c0_i32 = arith.constant 0 : i32
    %c0_i32_0 = arith.constant 0 : i32
    %c0_i32_1 = arith.constant 0 : i32
    return %c0_i32, %c0_i32_0 : i32, i32
  }
  func.func @transform_7(%arg0: i32) -> (i32, i32) {
    %c0_i32 = arith.constant 0 : i32
    %c0_i32_0 = arith.constant 0 : i32
    %c0_i32_1 = arith.constant 0 : i32
    return %c0_i32, %c0_i32_0 : i32, i32
  }
  func.func @transform_8(%arg0: i32) -> (i32, i32) {
    %c0_i32 = arith.constant 0 : i32
    %c0_i32_0 = arith.constant 0 : i32
    %c0_i32_1 = arith.constant 0 : i32
    return %c0_i32, %c0_i32_0 : i32, i32
  }
  func.func @transform_9(%arg0: i32) -> (i32, i32) {
    %c0_i32 = arith.constant 0 : i32
    %c0_i32_0 = arith.constant 0 : i32
    %c0_i32_1 = arith.constant 0 : i32
    return %c0_i32, %c0_i32_0 : i32, i32
  }
  func.func @transform_10(%arg0: i32) -> (i32, i32) {
    %c0_i32 = arith.constant 0 : i32
    %c0_i32_0 = arith.constant 0 : i32
    %c0_i32_1 = arith.constant 0 : i32
    return %c0_i32, %c0_i32_0 : i32, i32
  }
  func.func @transform_11(%arg0: i32) -> (i32, i32) {
    %c0_i32 = arith.constant 0 : i32
    %c0_i32_0 = arith.constant 0 : i32
    %c0_i32_1 = arith.constant 0 : i32
    return %c0_i32, %c0_i32_0 : i32, i32
  }
  func.func @transform_12(%arg0: i32) -> (i32, i32, i32) {
    %c0_i32 = arith.constant 0 : i32
    %c0_i32_0 = arith.constant 0 : i32
    %c0_i32_1 = arith.constant 0 : i32
    return %arg0, %c0_i32, %c0_i32_0 : i32, i32, i32
  }
}

module attributes {stable_mosaic.version = 11 : i64} {
  func.func @gcn_resblock_kernel(%arg0: i32, %arg1: memref<2x16x128xbf16, #tpu.memory_space<vmem>>, %arg2: memref<32x16xbf16, #tpu.memory_space<vmem>>, %arg3: memref<384x128xbf16, #tpu.memory_space<vmem>>, %arg4: memref<1x128xf32, #tpu.memory_space<vmem>>, %arg5: memref<128x128xbf16, #tpu.memory_space<vmem>>, %arg6: memref<1x128xf32, #tpu.memory_space<vmem>>, %arg7: memref<1x128xf32, #tpu.memory_space<vmem>>, %arg8: memref<1x128xf32, #tpu.memory_space<vmem>>, %arg9: memref<384x128xbf16, #tpu.memory_space<vmem>>, %arg10: memref<1x128xf32, #tpu.memory_space<vmem>>, %arg11: memref<1x128xf32, #tpu.memory_space<vmem>>, %arg12: memref<1x128xf32, #tpu.memory_space<vmem>>, %arg13: memref<2x16x128xf32, #tpu.memory_space<vmem>>) attributes {dimension_semantics = [#tpu.dimension_semantics<parallel>], iteration_bounds = array<i64: 1>, scalar_prefetch = 0 : i64, scratch_operands = 0 : i64, tpu.core_type = #tpu.core_type<tc>, window_params = [{transform_indices = @transform_0, window_bounds = array<i64: 2, 16, 128>}, {pipeline_mode = #tpu.pipeline_mode<synchronous>, transform_indices = @transform_1, window_bounds = array<i64: 32, 16>}, {pipeline_mode = #tpu.pipeline_mode<synchronous>, transform_indices = @transform_2, window_bounds = array<i64: 384, 128>}, {pipeline_mode = #tpu.pipeline_mode<synchronous>, transform_indices = @transform_3, window_bounds = array<i64: 1, 128>}, {pipeline_mode = #tpu.pipeline_mode<synchronous>, transform_indices = @transform_4, window_bounds = array<i64: 128, 128>}, {pipeline_mode = #tpu.pipeline_mode<synchronous>, transform_indices = @transform_5, window_bounds = array<i64: 1, 128>}, {pipeline_mode = #tpu.pipeline_mode<synchronous>, transform_indices = @transform_6, window_bounds = array<i64: 1, 128>}, {pipeline_mode = #tpu.pipeline_mode<synchronous>, transform_indices = @transform_7, window_bounds = array<i64: 1, 128>}, {pipeline_mode = #tpu.pipeline_mode<synchronous>, transform_indices = @transform_8, window_bounds = array<i64: 384, 128>}, {pipeline_mode = #tpu.pipeline_mode<synchronous>, transform_indices = @transform_9, window_bounds = array<i64: 1, 128>}, {pipeline_mode = #tpu.pipeline_mode<synchronous>, transform_indices = @transform_10, window_bounds = array<i64: 1, 128>}, {pipeline_mode = #tpu.pipeline_mode<synchronous>, transform_indices = @transform_11, window_bounds = array<i64: 1, 128>}, {transform_indices = @transform_12, window_bounds = array<i64: 2, 16, 128>}]} {
    %c0 = arith.constant 0 : index
    %c0_0 = arith.constant 0 : index
    %0 = vector.load %arg2[%c0, %c0_0] : memref<32x16xbf16, #tpu.memory_space<vmem>>, vector<32x16xbf16>
    %c0_1 = arith.constant 0 : index
    %c0_2 = arith.constant 0 : index
    %1 = vector.load %arg3[%c0_1, %c0_2] : memref<384x128xbf16, #tpu.memory_space<vmem>>, vector<384x128xbf16>
    %c0_3 = arith.constant 0 : index
    %c0_4 = arith.constant 0 : index
    %2 = vector.load %arg4[%c0_3, %c0_4] : memref<1x128xf32, #tpu.memory_space<vmem>>, vector<1x128xf32>
    %c0_5 = arith.constant 0 : index
    %c0_6 = arith.constant 0 : index
    %3 = vector.load %arg9[%c0_5, %c0_6] : memref<384x128xbf16, #tpu.memory_space<vmem>>, vector<384x128xbf16>
    %c0_7 = arith.constant 0 : index
    %c0_8 = arith.constant 0 : index
    %4 = vector.load %arg10[%c0_7, %c0_8] : memref<1x128xf32, #tpu.memory_space<vmem>>, vector<1x128xf32>
    %c0_9 = arith.constant 0 : index
    %c0_10 = arith.constant 0 : index
    %5 = vector.load %arg7[%c0_9, %c0_10] : memref<1x128xf32, #tpu.memory_space<vmem>>, vector<1x128xf32>
    %c0_11 = arith.constant 0 : index
    %c0_12 = arith.constant 0 : index
    %6 = vector.load %arg8[%c0_11, %c0_12] : memref<1x128xf32, #tpu.memory_space<vmem>>, vector<1x128xf32>
    %c0_13 = arith.constant 0 : index
    %c0_14 = arith.constant 0 : index
    %7 = vector.load %arg11[%c0_13, %c0_14] : memref<1x128xf32, #tpu.memory_space<vmem>>, vector<1x128xf32>
    %c0_15 = arith.constant 0 : index
    %c0_16 = arith.constant 0 : index
    %8 = vector.load %arg12[%c0_15, %c0_16] : memref<1x128xf32, #tpu.memory_space<vmem>>, vector<1x128xf32>
    %c0_17 = arith.constant 0 : index
    %c0_18 = arith.constant 0 : index
    %9 = vector.load %arg5[%c0_17, %c0_18] : memref<128x128xbf16, #tpu.memory_space<vmem>>, vector<128x128xbf16>
    %c0_19 = arith.constant 0 : index
    %c0_20 = arith.constant 0 : index
    %10 = vector.load %arg6[%c0_19, %c0_20] : memref<1x128xf32, #tpu.memory_space<vmem>>, vector<1x128xf32>
    %c0_21 = arith.constant 0 : index
    %c0_22 = arith.constant 0 : index
    %c0_23 = arith.constant 0 : index
    %11 = vector.load %arg1[%c0_21, %c0_22, %c0_23] : memref<2x16x128xbf16, #tpu.memory_space<vmem>>, vector<1x16x128xbf16>
    %12 = vector.shape_cast %11 : vector<1x16x128xbf16> to vector<16x128xbf16>
    %cst = arith.constant dense<0.000000e+00> : vector<32x128xf32>
    %13 = tpu.matmul %0, %12, %cst {dimension_numbers = #tpu.dot_dimension_numbers<[1], [0], [0], [1], [0, 0, 1, 1], [], []>} : vector<32x16xbf16>, vector<16x128xbf16>, vector<32x128xf32> -> vector<32x128xf32>
    %14 = vector.extract_strided_slice %13 {offsets = [0, 0], sizes = [16, 128], strides = [1, 1]} : vector<32x128xf32> to vector<16x128xf32>
    %15 = arith.truncf %14 : vector<16x128xf32> to vector<16x128xbf16>
    %16 = vector.extract_strided_slice %13 {offsets = [16, 0], sizes = [16, 128], strides = [1, 1]} : vector<32x128xf32> to vector<16x128xf32>
    %17 = arith.truncf %16 : vector<16x128xf32> to vector<16x128xbf16>
    %18 = tpu.concatenate %12, %15, %17 in 1 : vector<16x128xbf16>, vector<16x128xbf16>, vector<16x128xbf16> -> vector<16x384xbf16>
    %cst_24 = arith.constant dense<0.000000e+00> : vector<16x128xf32>
    %19 = tpu.matmul %18, %1, %cst_24 {dimension_numbers = #tpu.dot_dimension_numbers<[1], [0], [0], [1], [0, 0, 1, 1], [], []>} : vector<16x384xbf16>, vector<384x128xbf16>, vector<16x128xf32> -> vector<16x128xf32>
    %20 = vector.broadcast %2 : vector<1x128xf32> to vector<16x128xf32>
    %21 = arith.addf %19, %20 : vector<16x128xf32>
    %cst_25 = arith.constant dense<0.000000e+00> : vector<16x128xf32>
    %22 = tpu.matmul %12, %9, %cst_25 {dimension_numbers = #tpu.dot_dimension_numbers<[1], [0], [0], [1], [0, 0, 1, 1], [], []>} : vector<16x128xbf16>, vector<128x128xbf16>, vector<16x128xf32> -> vector<16x128xf32>
    %23 = vector.broadcast %10 : vector<1x128xf32> to vector<16x128xf32>
    %24 = arith.addf %22, %23 : vector<16x128xf32>
    %cst_26 = arith.constant dense<0.000000e+00> : vector<16xf32>
    %25 = vector.multi_reduction <add>, %21, %cst_26 [1] : vector<16x128xf32> to vector<16xf32>
    %26 = vector.shape_cast %25 : vector<16xf32> to vector<16x1xf32>
    %cst_27 = arith.constant 6.250000e-02 : f32
    %27 = vector.broadcast %cst_27 : f32 to vector<16x1xf32>
    %28 = arith.mulf %26, %27 : vector<16x1xf32>
    %29 = arith.mulf %21, %21 : vector<16x128xf32>
    %cst_28 = arith.constant dense<0.000000e+00> : vector<16xf32>
    %30 = vector.multi_reduction <add>, %29, %cst_28 [1] : vector<16x128xf32> to vector<16xf32>
    %31 = vector.shape_cast %30 : vector<16xf32> to vector<16x1xf32>
    %cst_29 = arith.constant 6.250000e-02 : f32
    %32 = vector.broadcast %cst_29 : f32 to vector<16x1xf32>
    %33 = arith.mulf %31, %32 : vector<16x1xf32>
    %34 = arith.mulf %28, %28 : vector<16x1xf32>
    %35 = arith.subf %33, %34 : vector<16x1xf32>
    %36 = vector.broadcast %28 : vector<16x1xf32> to vector<16x128xf32>
    %37 = arith.subf %21, %36 : vector<16x128xf32>
    %cst_30 = arith.constant 9.99999997E-7 : f32
    %38 = vector.broadcast %cst_30 : f32 to vector<16x1xf32>
    %39 = arith.addf %35, %38 : vector<16x1xf32>
    %40 = math.rsqrt %39 : vector<16x1xf32>
    %41 = vector.broadcast %40 : vector<16x1xf32> to vector<16x128xf32>
    %42 = arith.mulf %37, %41 : vector<16x128xf32>
    %43 = vector.broadcast %5 : vector<1x128xf32> to vector<16x128xf32>
    %44 = arith.mulf %42, %43 : vector<16x128xf32>
    %45 = vector.broadcast %6 : vector<1x128xf32> to vector<16x128xf32>
    %46 = arith.addf %44, %45 : vector<16x128xf32>
    %cst_31 = arith.constant 0.000000e+00 : f32
    %47 = vector.broadcast %cst_31 : f32 to vector<16x128xf32>
    %48 = arith.maximumf %46, %47 : vector<16x128xf32>
    %49 = arith.truncf %48 : vector<16x128xf32> to vector<16x128xbf16>
    %cst_32 = arith.constant dense<0.000000e+00> : vector<32x128xf32>
    %50 = tpu.matmul %0, %49, %cst_32 {dimension_numbers = #tpu.dot_dimension_numbers<[1], [0], [0], [1], [0, 0, 1, 1], [], []>} : vector<32x16xbf16>, vector<16x128xbf16>, vector<32x128xf32> -> vector<32x128xf32>
    %51 = vector.extract_strided_slice %50 {offsets = [0, 0], sizes = [16, 128], strides = [1, 1]} : vector<32x128xf32> to vector<16x128xf32>
    %52 = arith.truncf %51 : vector<16x128xf32> to vector<16x128xbf16>
    %53 = vector.extract_strided_slice %50 {offsets = [16, 0], sizes = [16, 128], strides = [1, 1]} : vector<32x128xf32> to vector<16x128xf32>
    %54 = arith.truncf %53 : vector<16x128xf32> to vector<16x128xbf16>
    %55 = tpu.concatenate %49, %52, %54 in 1 : vector<16x128xbf16>, vector<16x128xbf16>, vector<16x128xbf16> -> vector<16x384xbf16>
    %cst_33 = arith.constant dense<0.000000e+00> : vector<16x128xf32>
    %56 = tpu.matmul %55, %3, %cst_33 {dimension_numbers = #tpu.dot_dimension_numbers<[1], [0], [0], [1], [0, 0, 1, 1], [], []>} : vector<16x384xbf16>, vector<384x128xbf16>, vector<16x128xf32> -> vector<16x128xf32>
    %57 = vector.broadcast %4 : vector<1x128xf32> to vector<16x128xf32>
    %58 = arith.addf %56, %57 : vector<16x128xf32>
    %59 = arith.addf %58, %24 : vector<16x128xf32>
    %cst_34 = arith.constant dense<0.000000e+00> : vector<16xf32>
    %60 = vector.multi_reduction <add>, %59, %cst_34 [1] : vector<16x128xf32> to vector<16xf32>
    %61 = vector.shape_cast %60 : vector<16xf32> to vector<16x1xf32>
    %cst_35 = arith.constant 6.250000e-02 : f32
    %62 = vector.broadcast %cst_35 : f32 to vector<16x1xf32>
    %63 = arith.mulf %61, %62 : vector<16x1xf32>
    %64 = arith.mulf %59, %59 : vector<16x128xf32>
    %cst_36 = arith.constant dense<0.000000e+00> : vector<16xf32>
    %65 = vector.multi_reduction <add>, %64, %cst_36 [1] : vector<16x128xf32> to vector<16xf32>
    %66 = vector.shape_cast %65 : vector<16xf32> to vector<16x1xf32>
    %cst_37 = arith.constant 6.250000e-02 : f32
    %67 = vector.broadcast %cst_37 : f32 to vector<16x1xf32>
    %68 = arith.mulf %66, %67 : vector<16x1xf32>
    %69 = arith.mulf %63, %63 : vector<16x1xf32>
    %70 = arith.subf %68, %69 : vector<16x1xf32>
    %71 = vector.broadcast %63 : vector<16x1xf32> to vector<16x128xf32>
    %72 = arith.subf %59, %71 : vector<16x128xf32>
    %cst_38 = arith.constant 9.99999997E-7 : f32
    %73 = vector.broadcast %cst_38 : f32 to vector<16x1xf32>
    %74 = arith.addf %70, %73 : vector<16x1xf32>
    %75 = math.rsqrt %74 : vector<16x1xf32>
    %76 = vector.broadcast %75 : vector<16x1xf32> to vector<16x128xf32>
    %77 = arith.mulf %72, %76 : vector<16x128xf32>
    %78 = vector.broadcast %7 : vector<1x128xf32> to vector<16x128xf32>
    %79 = arith.mulf %77, %78 : vector<16x128xf32>
    %80 = vector.broadcast %8 : vector<1x128xf32> to vector<16x128xf32>
    %81 = arith.addf %79, %80 : vector<16x128xf32>
    %c0_39 = arith.constant 0 : index
    %c0_40 = arith.constant 0 : index
    %c0_41 = arith.constant 0 : index
    %82 = vector.load %arg13[%c0_39, %c0_40, %c0_41] : memref<2x16x128xf32, #tpu.memory_space<vmem>>, vector<1x16x128xf32>
    %83 = vector.shape_cast %82 : vector<1x16x128xf32> to vector<16x128xf32>
    %84 = vector.shape_cast %81 : vector<16x128xf32> to vector<1x16x128xf32>
    tpu.vector_store %arg13[%c0_39, %c0_40, %c0_41], %84 {strides = array<i32>} : memref<2x16x128xf32, #tpu.memory_space<vmem>>, vector<1x16x128xf32>,
    %c1 = arith.constant 1 : index
    %c0_42 = arith.constant 0 : index
    %c0_43 = arith.constant 0 : index
    %85 = vector.load %arg1[%c1, %c0_42, %c0_43] : memref<2x16x128xbf16, #tpu.memory_space<vmem>>, vector<1x16x128xbf16>
    %86 = vector.shape_cast %85 : vector<1x16x128xbf16> to vector<16x128xbf16>
    %cst_44 = arith.constant dense<0.000000e+00> : vector<32x128xf32>
    %87 = tpu.matmul %0, %86, %cst_44 {dimension_numbers = #tpu.dot_dimension_numbers<[1], [0], [0], [1], [0, 0, 1, 1], [], []>} : vector<32x16xbf16>, vector<16x128xbf16>, vector<32x128xf32> -> vector<32x128xf32>
    %88 = vector.extract_strided_slice %87 {offsets = [0, 0], sizes = [16, 128], strides = [1, 1]} : vector<32x128xf32> to vector<16x128xf32>
    %89 = arith.truncf %88 : vector<16x128xf32> to vector<16x128xbf16>
    %90 = vector.extract_strided_slice %87 {offsets = [16, 0], sizes = [16, 128], strides = [1, 1]} : vector<32x128xf32> to vector<16x128xf32>
    %91 = arith.truncf %90 : vector<16x128xf32> to vector<16x128xbf16>
    %92 = tpu.concatenate %86, %89, %91 in 1 : vector<16x128xbf16>, vector<16x128xbf16>, vector<16x128xbf16> -> vector<16x384xbf16>
    %cst_45 = arith.constant dense<0.000000e+00> : vector<16x128xf32>
    %93 = tpu.matmul %92, %1, %cst_45 {dimension_numbers = #tpu.dot_dimension_numbers<[1], [0], [0], [1], [0, 0, 1, 1], [], []>} : vector<16x384xbf16>, vector<384x128xbf16>, vector<16x128xf32> -> vector<16x128xf32>
    %94 = vector.broadcast %2 : vector<1x128xf32> to vector<16x128xf32>
    %95 = arith.addf %93, %94 : vector<16x128xf32>
    %cst_46 = arith.constant dense<0.000000e+00> : vector<16x128xf32>
    %96 = tpu.matmul %86, %9, %cst_46 {dimension_numbers = #tpu.dot_dimension_numbers<[1], [0], [0], [1], [0, 0, 1, 1], [], []>} : vector<16x128xbf16>, vector<128x128xbf16>, vector<16x128xf32> -> vector<16x128xf32>
    %97 = vector.broadcast %10 : vector<1x128xf32> to vector<16x128xf32>
    %98 = arith.addf %96, %97 : vector<16x128xf32>
    %cst_47 = arith.constant dense<0.000000e+00> : vector<16xf32>
    %99 = vector.multi_reduction <add>, %95, %cst_47 [1] : vector<16x128xf32> to vector<16xf32>
    %100 = vector.shape_cast %99 : vector<16xf32> to vector<16x1xf32>
    %cst_48 = arith.constant 6.250000e-02 : f32
    %101 = vector.broadcast %cst_48 : f32 to vector<16x1xf32>
    %102 = arith.mulf %100, %101 : vector<16x1xf32>
    %103 = arith.mulf %95, %95 : vector<16x128xf32>
    %cst_49 = arith.constant dense<0.000000e+00> : vector<16xf32>
    %104 = vector.multi_reduction <add>, %103, %cst_49 [1] : vector<16x128xf32> to vector<16xf32>
    %105 = vector.shape_cast %104 : vector<16xf32> to vector<16x1xf32>
    %cst_50 = arith.constant 6.250000e-02 : f32
    %106 = vector.broadcast %cst_50 : f32 to vector<16x1xf32>
    %107 = arith.mulf %105, %106 : vector<16x1xf32>
    %108 = arith.mulf %102, %102 : vector<16x1xf32>
    %109 = arith.subf %107, %108 : vector<16x1xf32>
    %110 = vector.broadcast %102 : vector<16x1xf32> to vector<16x128xf32>
    %111 = arith.subf %95, %110 : vector<16x128xf32>
    %cst_51 = arith.constant 9.99999997E-7 : f32
    %112 = vector.broadcast %cst_51 : f32 to vector<16x1xf32>
    %113 = arith.addf %109, %112 : vector<16x1xf32>
    %114 = math.rsqrt %113 : vector<16x1xf32>
    %115 = vector.broadcast %114 : vector<16x1xf32> to vector<16x128xf32>
    %116 = arith.mulf %111, %115 : vector<16x128xf32>
    %117 = vector.broadcast %5 : vector<1x128xf32> to vector<16x128xf32>
    %118 = arith.mulf %116, %117 : vector<16x128xf32>
    %119 = vector.broadcast %6 : vector<1x128xf32> to vector<16x128xf32>
    %120 = arith.addf %118, %119 : vector<16x128xf32>
    %cst_52 = arith.constant 0.000000e+00 : f32
    %121 = vector.broadcast %cst_52 : f32 to vector<16x128xf32>
    %122 = arith.maximumf %120, %121 : vector<16x128xf32>
    %123 = arith.truncf %122 : vector<16x128xf32> to vector<16x128xbf16>
    %cst_53 = arith.constant dense<0.000000e+00> : vector<32x128xf32>
    %124 = tpu.matmul %0, %123, %cst_53 {dimension_numbers = #tpu.dot_dimension_numbers<[1], [0], [0], [1], [0, 0, 1, 1], [], []>} : vector<32x16xbf16>, vector<16x128xbf16>, vector<32x128xf32> -> vector<32x128xf32>
    %125 = vector.extract_strided_slice %124 {offsets = [0, 0], sizes = [16, 128], strides = [1, 1]} : vector<32x128xf32> to vector<16x128xf32>
    %126 = arith.truncf %125 : vector<16x128xf32> to vector<16x128xbf16>
    %127 = vector.extract_strided_slice %124 {offsets = [16, 0], sizes = [16, 128], strides = [1, 1]} : vector<32x128xf32> to vector<16x128xf32>
    %128 = arith.truncf %127 : vector<16x128xf32> to vector<16x128xbf16>
    %129 = tpu.concatenate %123, %126, %128 in 1 : vector<16x128xbf16>, vector<16x128xbf16>, vector<16x128xbf16> -> vector<16x384xbf16>
    %cst_54 = arith.constant dense<0.000000e+00> : vector<16x128xf32>
    %130 = tpu.matmul %129, %3, %cst_54 {dimension_numbers = #tpu.dot_dimension_numbers<[1], [0], [0], [1], [0, 0, 1, 1], [], []>} : vector<16x384xbf16>, vector<384x128xbf16>, vector<16x128xf32> -> vector<16x128xf32>
    %131 = vector.broadcast %4 : vector<1x128xf32> to vector<16x128xf32>
    %132 = arith.addf %130, %131 : vector<16x128xf32>
    %133 = arith.addf %132, %98 : vector<16x128xf32>
    %cst_55 = arith.constant dense<0.000000e+00> : vector<16xf32>
    %134 = vector.multi_reduction <add>, %133, %cst_55 [1] : vector<16x128xf32> to vector<16xf32>
    %135 = vector.shape_cast %134 : vector<16xf32> to vector<16x1xf32>
    %cst_56 = arith.constant 6.250000e-02 : f32
    %136 = vector.broadcast %cst_56 : f32 to vector<16x1xf32>
    %137 = arith.mulf %135, %136 : vector<16x1xf32>
    %138 = arith.mulf %133, %133 : vector<16x128xf32>
    %cst_57 = arith.constant dense<0.000000e+00> : vector<16xf32>
    %139 = vector.multi_reduction <add>, %138, %cst_57 [1] : vector<16x128xf32> to vector<16xf32>
    %140 = vector.shape_cast %139 : vector<16xf32> to vector<16x1xf32>
    %cst_58 = arith.constant 6.250000e-02 : f32
    %141 = vector.broadcast %cst_58 : f32 to vector<16x1xf32>
    %142 = arith.mulf %140, %141 : vector<16x1xf32>
    %143 = arith.mulf %137, %137 : vector<16x1xf32>
    %144 = arith.subf %142, %143 : vector<16x1xf32>
    %145 = vector.broadcast %137 : vector<16x1xf32> to vector<16x128xf32>
    %146 = arith.subf %133, %145 : vector<16x128xf32>
    %cst_59 = arith.constant 9.99999997E-7 : f32
    %147 = vector.broadcast %cst_59 : f32 to vector<16x1xf32>
    %148 = arith.addf %144, %147 : vector<16x1xf32>
    %149 = math.rsqrt %148 : vector<16x1xf32>
    %150 = vector.broadcast %149 : vector<16x1xf32> to vector<16x128xf32>
    %151 = arith.mulf %146, %150 : vector<16x128xf32>
    %152 = vector.broadcast %7 : vector<1x128xf32> to vector<16x128xf32>
    %153 = arith.mulf %151, %152 : vector<16x128xf32>
    %154 = vector.broadcast %8 : vector<1x128xf32> to vector<16x128xf32>
    %155 = arith.addf %153, %154 : vector<16x128xf32>
    %c1_60 = arith.constant 1 : index
    %c0_61 = arith.constant 0 : index
    %c0_62 = arith.constant 0 : index
    %156 = vector.load %arg13[%c1_60, %c0_61, %c0_62] : memref<2x16x128xf32, #tpu.memory_space<vmem>>, vector<1x16x128xf32>
    %157 = vector.shape_cast %156 : vector<1x16x128xf32> to vector<16x128xf32>
    %158 = vector.shape_cast %155 : vector<16x128xf32> to vector<1x16x128xf32>
    tpu.vector_store %arg13[%c1_60, %c0_61, %c0_62], %158 {strides = array<i32>} : memref<2x16x128xf32, #tpu.memory_space<vmem>>, vector<1x16x128xf32>,
    return
  }
  func.func @transform_0(%arg0: i32) -> (i32, i32, i32) {
    %c0_i32 = arith.constant 0 : i32
    %c0_i32_0 = arith.constant 0 : i32
    %c0_i32_1 = arith.constant 0 : i32
    return %arg0, %c0_i32, %c0_i32_0 : i32, i32, i32
  }
  func.func @transform_1(%arg0: i32) -> (i32, i32) {
    %c0_i32 = arith.constant 0 : i32
    %c0_i32_0 = arith.constant 0 : i32
    %c0_i32_1 = arith.constant 0 : i32
    return %c0_i32, %c0_i32_0 : i32, i32
  }
  func.func @transform_2(%arg0: i32) -> (i32, i32) {
    %c0_i32 = arith.constant 0 : i32
    %c0_i32_0 = arith.constant 0 : i32
    %c0_i32_1 = arith.constant 0 : i32
    return %c0_i32, %c0_i32_0 : i32, i32
  }
  func.func @transform_3(%arg0: i32) -> (i32, i32) {
    %c0_i32 = arith.constant 0 : i32
    %c0_i32_0 = arith.constant 0 : i32
    %c0_i32_1 = arith.constant 0 : i32
    return %c0_i32, %c0_i32_0 : i32, i32
  }
  func.func @transform_4(%arg0: i32) -> (i32, i32) {
    %c0_i32 = arith.constant 0 : i32
    %c0_i32_0 = arith.constant 0 : i32
    %c0_i32_1 = arith.constant 0 : i32
    return %c0_i32, %c0_i32_0 : i32, i32
  }
  func.func @transform_5(%arg0: i32) -> (i32, i32) {
    %c0_i32 = arith.constant 0 : i32
    %c0_i32_0 = arith.constant 0 : i32
    %c0_i32_1 = arith.constant 0 : i32
    return %c0_i32, %c0_i32_0 : i32, i32
  }
  func.func @transform_6(%arg0: i32) -> (i32, i32) {
    %c0_i32 = arith.constant 0 : i32
    %c0_i32_0 = arith.constant 0 : i32
    %c0_i32_1 = arith.constant 0 : i32
    return %c0_i32, %c0_i32_0 : i32, i32
  }
  func.func @transform_7(%arg0: i32) -> (i32, i32) {
    %c0_i32 = arith.constant 0 : i32
    %c0_i32_0 = arith.constant 0 : i32
    %c0_i32_1 = arith.constant 0 : i32
    return %c0_i32, %c0_i32_0 : i32, i32
  }
  func.func @transform_8(%arg0: i32) -> (i32, i32) {
    %c0_i32 = arith.constant 0 : i32
    %c0_i32_0 = arith.constant 0 : i32
    %c0_i32_1 = arith.constant 0 : i32
    return %c0_i32, %c0_i32_0 : i32, i32
  }
  func.func @transform_9(%arg0: i32) -> (i32, i32) {
    %c0_i32 = arith.constant 0 : i32
    %c0_i32_0 = arith.constant 0 : i32
    %c0_i32_1 = arith.constant 0 : i32
    return %c0_i32, %c0_i32_0 : i32, i32
  }
  func.func @transform_10(%arg0: i32) -> (i32, i32) {
    %c0_i32 = arith.constant 0 : i32
    %c0_i32_0 = arith.constant 0 : i32
    %c0_i32_1 = arith.constant 0 : i32
    return %c0_i32, %c0_i32_0 : i32, i32
  }
  func.func @transform_11(%arg0: i32) -> (i32, i32) {
    %c0_i32 = arith.constant 0 : i32
    %c0_i32_0 = arith.constant 0 : i32
    %c0_i32_1 = arith.constant 0 : i32
    return %c0_i32, %c0_i32_0 : i32, i32
  }
  func.func @transform_12(%arg0: i32) -> (i32, i32, i32) {
    %c0_i32 = arith.constant 0 : i32
    %c0_i32_0 = arith.constant 0 : i32
    %c0_i32_1 = arith.constant 0 : i32
    return %arg0, %c0_i32, %c0_i32_0 : i32, i32, i32
  }
}

</mosaic_0001>

<bundles_post_ra>
// kernel: tpu_custom_call.1
= control target key start
LH: loop header
LB: loop body
LE: loop exit
PB: predicated region body
PF: predicated region fallthrough
CT: control target
= control target key end

     0   :  { %17 = vsyncpa [#allocation3], 0  ;;  %s2441_s0 = inlined_call_operand.vmem [shape: bf16[2,16,128], index: 0, kind: input, shape index: {}]   ;;  %s2442_s1 = inlined_call_operand.vmem [shape: bf16[32,16], index: 1, kind: input, shape index: {}]   ;;  %s2443_s2 = inlined_call_operand.hbm [shape: bf16[384,128], index: 2, kind: input, shape index: {}]   ;;  %s2444_s3 = inlined_call_operand.vmem [shape: f32[1,128], index: 3, kind: input, shape index: {}]   ;;  %s2445_s4 = inlined_call_operand.hbm [shape: bf16[128,128], index: 4, kind: input, shape index: {}]   ;;  %s2446_s5 = inlined_call_operand.vmem [shape: f32[1,128], index: 5, kind: input, shape index: {}]   ;;  %s2447_s6 = inlined_call_operand.vmem [shape: f32[1,128], index: 6, kind: input, shape index: {}]   ;;  %s2448_s7 = inlined_call_operand.vmem [shape: f32[1,128], index: 7, kind: input, shape index: {}]   ;;  %s2449_s8 = inlined_call_operand.hbm [shape: bf16[384,128], index: 8, kind: input, shape index: {}]   ;;  %s2450_s9 = inlined_call_operand.vmem [shape: f32[1,128], index: 9, kind: input, shape index: {}]   ;;  %s2451_s10 = inlined_call_operand.vmem [shape: f32[1,128], index: 10, kind: input, shape index: {}]   ;;  %s2452_s11 = inlined_call_operand.vmem [shape: f32[1,128], index: 11, kind: input, shape index: {}]   ;;  %s2453_s12 = inlined_call_operand.hbm [shape: f32[2,16,128], index: 12, kind: output, shape index: {}]  }
   0x1   :  { %18 = vsyncpa [#allocation6], 0 }
   0x2   :  { %19 = vsyncpa [#allocation4], 0  ;;  %s1934_s21 = smov [#allocation5]   ;;  %s1935_s23 = smov [#allocation2]  }
   0x3   :  { %s43_s22 = sshll.u32 %s1934_s21, 4  ;;  %s29_s24 = sshll.u32 %s1935_s23, 4  ;;  %s44_s22 = int_to_ptr.vmem [resolvable:$true] %s43_s22  ;;  %s30_s24 = int_to_ptr.vmem [resolvable:$true] %s29_s24 }
   0x4   :  { %s1856_s25 = scalar_lea.vmem %s44_s22, 1024  ;;  %p1861_p1 = scmp.lt.s32.totalorder %s44_s22, %s44_s22 }
   0x5   :  { %p1857_p0 = scmp.ne.s32.totalorder %s44_s22, %s1856_s25  ;;  %p1862_p2 = scmp.lt.s32.totalorder %s1856_s25, %s1856_s25 }
   0x7   :  { %p1863_p3 = por %p1862_p2, %p1861_p1 }
   0x9   :  { %p1864_p4 = pnand %p1863_p3, %p1857_p0 }
   0xb   :  { %1867 = shalt.err (!%p1864_p4)
}
   0xc   :  { %s1936_s26 = smov 64   ;;  %s1937_s27 = smov 4  }
   0xd   :  { %49 = dma.hbm_to_vmem [thread:$0]  %s2445_s4, 1024, %s44_s22, [#allocation6], %s1936_s26, %s1936_s26, %s1937_s27  }
   0xe   :  { %s1876_s30 = scalar_lea.vmem %s30_s24, 3072  ;;  %p1881_p6 = scmp.lt.s32.totalorder %s30_s24, %s30_s24 }
   0xf   :  { %p1877_p5 = scmp.ne.s32.totalorder %s30_s24, %s1876_s30  ;;  %p1882_p7 = scmp.lt.s32.totalorder %s1876_s30, %s1876_s30 }
  0x11   :  { %p1883_p8 = por %p1882_p7, %p1881_p6 }
  0x13   :  { %p1884_p9 = pnand %p1883_p8, %p1877_p5 }
  0x15   :  { %1887 = shalt.err (!%p1884_p9)
}
  0x16   :  { %35 = dma.hbm_to_vmem [thread:$0]  %s2443_s2, 3072, %s30_s24, [#allocation3], %s1936_s26, %s1936_s26, %s1937_s27  }
  0x17   :  { %s1938_s15 = smov [#allocation7]  }
  0x18   :  { %s61_s16 = sshll.u32 %s1938_s15, 4  ;;  %s62_s16 = int_to_ptr.vmem [resolvable:$true] %s61_s16 }
  0x19   :  { %s1896_s17 = scalar_lea.vmem %s62_s16, 3072  ;;  %p1901_p11 = scmp.lt.s32.totalorder %s62_s16, %s62_s16 }
  0x1a   :  { %p1897_p10 = scmp.ne.s32.totalorder %s62_s16, %s1896_s17  ;;  %p1902_p12 = scmp.lt.s32.totalorder %s1896_s17, %s1896_s17 }
  0x1c   :  { %p1903_p13 = por %p1902_p12, %p1901_p11 }
  0x1e   :  { %p1904_p0 = pnand %p1903_p13, %p1897_p10 }
  0x20   :  { %1907 = shalt.err (!%p1904_p0)
}
  0x21   :  { %67 = dma.hbm_to_vmem [thread:$0]  %s2449_s8, 3072, %s62_s16, [#allocation6], %s1936_s26, %s1936_s26, %s1937_s27  }
  0x22   :  { %1928 = dma.done.wait [#allocation3], 3072  }
  0x23   :  { %1929 = vsyncadd [#allocation3], 4294964224 }
  0x24   :  { %1930 = dma.done.wait [#allocation6], 4096  }
  0x25   :  { %1931 = vsyncadd [#allocation6], 4294963200  ;;  %v2461_v0 = vmov 0.0   ;;  %v2022_v1 = vld [vmem:[%s2441_s0] sm:$0xff]   ;;  %vm225_vm0 = vcmask 130048   ;;  %v2033_v3 = vld [vmem:[%s2442_s1 + $0x8] sm:$0xff]  }
  0x26   :  { %1623 = vmatprep.subr.bf16.mxu0 %v2461_v0  ;;  %v2027_v2 = vld [vmem:[%s2442_s1] sm:$0xff]   ;;  %1617 = vmatprep.subr.bf16.mxu1 %v2022_v1  ;;  %v2038_v4 = vld [vmem:[#allocation2 + $0xb8] sm:$0xff]   ;;  %v2048_v7 = vld [vmem:[#allocation2 + $0xb0] sm:$0xff]   ;;  %vm1940_vm1 = vmmov 0  }
  0x27   :  { %1618 = vmatpush3.bf16.msra.mxu1 %v2022_v1  ;;  %1619 = vmatprep.mubr.msk.bf16.mxu1 %vm225_vm0, %v2027_v2  ;;  %v2040_v5 = vld [vmem:[#allocation2 + $0x78] sm:$0xff]   ;;  %v2052_v8 = vld [vmem:[#allocation2 + $0x70] sm:$0xff]   ;;  %v2058_v10 = vld [vmem:[#allocation2 + $0xa8] sm:$0xff]  }
  0x28   :  { %1624 = vmatpush3.bf16.msra.mxu0 %v2038_v4  ;;  %v2043_v6 = vld [vmem:[#allocation2 + $0x38] sm:$0xff]   ;;  %1466 = vmatprep.subr.bf16.mxu1 %v2040_v5  ;;  %v2054_v9 = vld [vmem:[#allocation2 + $0x30] sm:$0xff]   ;;  %v2061_v11 = vld [vmem:[#allocation2 + $0x68] sm:$0xff]  }
  0x29   :  { %1625 = vmatprep.subr.bf16.mxu0 %v2461_v0  ;;  %v2064_v12 = vld [vmem:[#allocation2 + $0x28] sm:$0xff]   ;;  %v2067_v13 = vld [vmem:[#allocation2 + $0xa0] sm:$0xff]   ;;  %v2077_v16 = vld [vmem:[#allocation2 + $0x58] sm:$0xff]   ;;  %1639 = vmatprep.mubr.msk.bf16.mxu0 %vm1940_vm1, %v2461_v0 }
  0x2a   :  { %1620 = vmatmul.mubr.msk.bf16.vlgmr.msra.gmra.mxu1 %vm225_vm0, %v2033_v3  ;;  %v2070_v14 = vld [vmem:[#allocation2 + $0x60] sm:$0xff]   ;;  %v2080_v17 = vld [vmem:[#allocation2 + $0x98] sm:$0xff]   ;;  %v2086_v19 = vld [vmem:[#allocation2 + $0x90] sm:$0xff]  }
  0x2b   :  { %1467 = vmatpush3.bf16.msra.mxu1 %v2043_v6  ;;  %v2074_v15 = vld [vmem:[#allocation2 + $0x20] sm:$0xff]   ;;  %v2083_v18 = vld [vmem:[#allocation2 + $0x18] sm:$0xff]   ;;  %v2089_v20 = vld [vmem:[#allocation2 + $0x50] sm:$0xff]  }
  0x2c   :  { %1626 = vmatpush3.bf16.msra.mxu0 %v2048_v7  ;;  %1468 = vmatprep.subr.bf16.mxu1 %v2052_v8  ;;  %v2092_v21 = vld [vmem:[#allocation2 + $0x10] sm:$0xff]   ;;  %v2100_v22 = vld [vmem:[#allocation2 + $0x88] sm:$0xff]   ;;  %v2109_v25 = vld [vmem:[#allocation2 + $0x80] sm:$0xff]  }
  0x2d   :  { %1627 = vmatprep.subr.bf16.mxu0 %v2461_v0  ;;  %v2103_v23 = vld [vmem:[#allocation2 + $0x48] sm:$0xff]   ;;  %v2113_v26 = vld [vmem:[#allocation2 + $0x40] sm:$0xff]   ;;  %v2144_v51 = vld [vmem:[#allocation5 + $0x38] sm:$0xff]  }
  0x2e   :  { %v2105_v24 = vld [vmem:[#allocation2 + $0x8] sm:$0xff]   ;;  %v2115_v27 = vld [vmem:[#allocation2] sm:$0xff]   ;;  %v2147_v52 = vld [vmem:[#allocation5 + $0x30] sm:$0xff]  }
  0x2f   :  { %1469 = vmatpush3.bf16.msra.mxu1 %v2054_v9  ;;  %v2130_v38 = vld [vmem:[%s2444_s3] ss:$0 sm:$0xff]  ;;  %v2151_v53 = vld [vmem:[#allocation5 + $0x28] sm:$0xff]   ;;  %v2159_v55 = vld [vmem:[#allocation5 + $0x18] sm:$0xff]  }
  0x30   :  { %1470 = vmatprep.subr.bf16.mxu1 %v2061_v11  ;;  %1628 = vmatpush3.bf16.msra.mxu0 %v2058_v10  ;;  %v2155_v54 = vld [vmem:[#allocation5 + $0x20] sm:$0xff]   ;;  %v2163_v56 = vld [vmem:[#allocation5 + $0x10] sm:$0xff]   ;;  %v2167_v57 = vld [vmem:[#allocation5 + $0x8] sm:$0xff]  }
  0x31   :  { %1629 = vmatprep.subr.bf16.mxu0 %v2461_v0  ;;  %v2171_v58 = vld [vmem:[#allocation5] sm:$0xff]   ;;  %v2175_v59 = vld [vmem:[#allocation7 + $0xb8] sm:$0xff]   ;;  %v2180_v60 = vld [vmem:[#allocation7 + $0xb0] sm:$0xff]  }
  0x32   :  { %v2186_v61 = vld [vmem:[#allocation7 + $0xa8] sm:$0xff]   ;;  %v2190_v62 = vld [vmem:[#allocation7 + $0xa0] sm:$0xff]   ;;  %v2194_v63 = vld [vmem:[#allocation7 + $0x98] sm:$0xff]  }
  0x33   :  { %1471 = vmatpush3.bf16.msra.mxu1 %v2064_v12 }
  0x34   :  { %1472 = vmatprep.subr.bf16.mxu1 %v2070_v14  ;;  %1630 = vmatpush3.bf16.msra.mxu0 %v2067_v13 }
  0x35   :  { %1631 = vmatprep.subr.bf16.mxu0 %v2461_v0 }
  0x37   :  { %1473 = vmatpush3.bf16.msra.mxu1 %v2074_v15 }
  0x38   :  { %1474 = vmatprep.subr.bf16.mxu1 %v2077_v16  ;;  %1632 = vmatpush3.bf16.msra.mxu0 %v2080_v17 }
  0x39   :  { %1633 = vmatprep.subr.bf16.mxu0 %v2461_v0 }
  0x3b   :  { %1475 = vmatpush3.bf16.msra.mxu1 %v2083_v18 }
  0x3c   :  { %1476 = vmatprep.subr.bf16.mxu1 %v2089_v20  ;;  %1634 = vmatpush3.bf16.msra.mxu0 %v2086_v19 }
  0x3d   :  { %1635 = vmatprep.subr.bf16.mxu0 %v2461_v0 }
  0x3f   :  { %1477 = vmatpush3.bf16.msra.mxu1 %v2092_v21 }
  0x40   :  { %1636 = vmatpush3.bf16.msra.mxu0 %v2100_v22  ;;  %1478 = vmatprep.subr.bf16.mxu1 %v2103_v23 }
  0x41   :  { %1637 = vmatprep.subr.bf16.mxu0 %v2461_v0 }
  0x43   :  { %1479 = vmatpush3.bf16.msra.mxu1 %v2105_v24 }
  0x44   :  { %1638 = vmatpush3.bf16.msra.mxu0 %v2109_v25  ;;  %1480 = vmatprep.subr.bf16.mxu1 %v2113_v26 }
  0x47   :  { %1481 = vmatpush3.bf16.msra.mxu1 %v2115_v27 }
  0x48   :  { %1643 = vmatprep.subr.bf16.mxu1 %v2461_v0 }
  0xea   :  { %v1621_v28 = vpop.f32.mrf.mxu1 }
  0xec   :  { %v266_v29 = vpop.f32.mrf.mxu1 }
  0xee   :  { %v1622_v30 = vpop.f32.mrf.mxu1 }
  0xef   :  { %v282_v31 = vpack.c.bf16 %v1622_v30, %v1621_v28 }
  0xf0   :  { %v269_v32 = vpop.f32.mrf.mxu1 }
  0xf1   :  { %v281_v33 = vpack.c.bf16 %v269_v32, %v266_v29  ;;  %1640 = vmatmul.mubr.bf16.vlgmr.msra.gmra.mxu0 %v282_v31 }
  0xf2   :  { %1665 = vmatprep.mubr.msk.bf16.mxu0 %vm225_vm0, %v2027_v2 }
  0xf3   :  { %465 = vmatprep.mubr.bf16.mxu1 %v281_v33 }
  0xf4   :  { %466 = vmatmul.mubr.bf16.vlgmr.msra.gmra.mxu1 %v2022_v1 }
  0xf5   :  { %1659 = vmatprep.mubr.msk.bf16.mxu1 %vm1940_vm1, %v2461_v0  ;;  %1644 = vmatpush3.bf16.msra.mxu1 %v2144_v51 }
  0xf6   :  { %1645 = vmatprep.subr.bf16.mxu1 %v2461_v0 }
  0xf9   :  { %1646 = vmatpush3.bf16.msra.mxu1 %v2147_v52 }
  0xfa   :  { %1647 = vmatprep.subr.bf16.mxu1 %v2461_v0 }
  0xfd   :  { %1648 = vmatpush3.bf16.msra.mxu1 %v2151_v53 }
  0xfe   :  { %1649 = vmatprep.subr.bf16.mxu1 %v2461_v0 }
 0x101   :  { %1650 = vmatpush3.bf16.msra.mxu1 %v2155_v54 }
 0x102   :  { %1651 = vmatprep.subr.bf16.mxu1 %v2461_v0 }
 0x105   :  { %1652 = vmatpush3.bf16.msra.mxu1 %v2159_v55 }
 0x106   :  { %1653 = vmatprep.subr.bf16.mxu1 %v2461_v0 }
 0x109   :  { %1654 = vmatpush3.bf16.msra.mxu1 %v2163_v56 }
 0x10a   :  { %1655 = vmatprep.subr.bf16.mxu1 %v2461_v0 }
 0x10d   :  { %1656 = vmatpush3.bf16.msra.mxu1 %v2167_v57 }
 0x10e   :  { %1657 = vmatprep.subr.bf16.mxu1 %v2461_v0 }
 0x111   :  { %1658 = vmatpush3.bf16.msra.mxu1 %v2171_v58 }
 0x112   :  { %1669 = vmatprep.subr.bf16.mxu1 %v2461_v0 }
 0x114   :  { %1660 = vmatmul.mubr.bf16.vlgmr.msra.gmra.mxu1 %v2022_v1  ;;  %v2198_v1 = vld [vmem:[#allocation7 + $0x90] sm:$0xff]  }
 0x115   :  { %1670 = vmatpush3.bf16.msra.mxu1 %v2175_v59  ;;  %1685 = vmatprep.mubr.msk.bf16.mxu1 %vm1940_vm1, %v2461_v0 }
 0x116   :  { %1671 = vmatprep.subr.bf16.mxu1 %v2461_v0 }
 0x119   :  { %1672 = vmatpush3.bf16.msra.mxu1 %v2180_v60 }
 0x11a   :  { %1673 = vmatprep.subr.bf16.mxu1 %v2461_v0 }
 0x11d   :  { %1674 = vmatpush3.bf16.msra.mxu1 %v2186_v61 }
 0x11e   :  { %1675 = vmatprep.subr.bf16.mxu1 %v2461_v0 }
 0x121   :  { %1676 = vmatpush3.bf16.msra.mxu1 %v2190_v62 }
 0x122   :  { %1677 = vmatprep.subr.bf16.mxu1 %v2461_v0 }
 0x125   :  { %1678 = vmatpush3.bf16.msra.mxu1 %v2194_v63 }
 0x126   :  { %1679 = vmatprep.subr.bf16.mxu1 %v2461_v0 }
 0x129   :  { %1680 = vmatpush3.bf16.msra.mxu1 %v2198_v1 }
 0x12a   :  { %1681 = vmatprep.subr.bf16.mxu1 %v2461_v0 }
 0x1b1   :  { %v508_v34 = vpop.f32.mrf.mxu0 }
 0x1b3   :  { %v1641_v35 = vpop.f32.mrf.mxu0 }
 0x1b4   :  { %v1482_v36 = vpop.f32.mrf.mxu1 }
 0x1b5   :  { %v511_v37 = vpop.f32.mrf.mxu0 }
 0x1b6   :  { %v1483_v39 = vpop.f32.mrf.mxu1 }
 0x1b7   :  { %v1484_v40 = vadd.f32 %v1483_v39, %v1482_v36  ;;  %v1642_v41 = vpop.f32.mrf.mxu0 }
 0x1b8   :  { %v1485_v42 = vpop.f32.mrf.mxu1 }
 0x1b9   :  { %v468_v43 = vadd.f32 %v1484_v40, %v2130_v38 }
 0x1ba   :  { %v1486_v44 = vpop.f32.mrf.mxu1 }
 0x1bb   :  { %v1487_v45 = vadd.f32 %v1486_v44, %v1485_v42  ;;  %v2133_v46 = vadd.f32 %v508_v34, %v468_v43 }
 0x1bd   :  { %v471_v47 = vadd.f32 %v1487_v45, %v2130_v38  ;;  %610 = vadd.xlane.f32.xlu0 %v2133_v46  ;;  %v616_v48 = vmul.f32 %v2133_v46, %v2133_v46  ;;  %v2207_v45 = vld [vmem:[%s2447_s6] ss:$0 sm:$0xff] }
 0x1bf   :  { %618 = vadd.xlane.f32.xlu1 %v616_v48  ;;  %v2139_v49 = vadd.f32 %v511_v37, %v471_v47 }
 0x1c1   :  { %612 = vadd.xlane.f32.xlu0 %v2139_v49  ;;  %v617_v50 = vmul.f32 %v2139_v49, %v2139_v49 }
 0x1c3   :  { %620 = vadd.xlane.f32.xlu1 %v617_v50 }
 0x246   :  { %v611_v28 = vpop.xlane.xlu0 %610 }
 0x247   :  { %v614_v29 = vmul.f32 0.0625, %v611_v28 }
 0x248   :  { %v619_v30 = vpop.xlane.xlu1 %618 }
 0x249   :  { %v624_v31 = vmul.f32 %v614_v29, %v614_v29  ;;  %v622_v32 = vmul.f32 0.0625, %v619_v30  ;;  %v628_v43 = vsub.f32 %v2133_v46, %v614_v29  ;;  %v2214_v30 = vld [vmem:[%s2448_s7] ss:$0 sm:$0xff] }
 0x24a   :  { %v613_v33 = vpop.xlane.xlu0 %612 }
 0x24b   :  { %v626_v34 = vsub.f32 %v622_v32, %v624_v31  ;;  %v615_v35 = vmul.f32 0.0625, %v613_v33 }
 0x24c   :  { %v621_v36 = vpop.xlane.xlu1 %620 }
 0x24d   :  { %v630_v37 = vadd.f32 1e-06, %v626_v34  ;;  %v625_v39 = vmul.f32 %v615_v35, %v615_v35  ;;  %v623_v40 = vmul.f32 0.0625, %v621_v36  ;;  %v629_v48 = vsub.f32 %v2139_v49, %v615_v35  ;;  %v2221_v49 = vld [vmem:[#allocation7 + $0x38] sm:$0xff]   ;;  %v2224_v35 = vld [vmem:[#allocation7 + $0x70] sm:$0xff]  }
 0x24f   :  { %1831 = vrsqrt.f32 %v630_v37  ;;  %v627_v41 = vsub.f32 %v623_v40, %v625_v39  ;;  %v2219_v37 = vld [vmem:[#allocation7 + $0x78] sm:$0xff]   ;;  %v2229_v39 = vld [vmem:[#allocation7 + $0x30] sm:$0xff]   ;;  %v2232_v40 = vld [vmem:[#allocation7 + $0x68] sm:$0xff]  }
 0x251   :  { %v631_v42 = vadd.f32 1e-06, %v627_v41  ;;  %v2235_v41 = vld [vmem:[#allocation7 + $0x28] sm:$0xff]  }
 0x253   :  { %1833 = vrsqrt.f32 %v631_v42  ;;  %v2238_v42 = vld [vmem:[#allocation7 + $0x60] sm:$0xff]  }
 0x254   :  { %2466 = vst [vmem:[#allocation12_spill] sm:$0xff] %v2238_v42 }
 0x25c   :  { %v1832_v44 = vpop.eup %1831 }
 0x25d   :  { %v634_v47 = vmul.f32 %v1832_v44, %v628_v43  ;;  %v2241_v43 = vld [vmem:[#allocation7 + $0x20] sm:$0xff]   ;;  %v2244_v44 = vld [vmem:[#allocation7 + $0x58] sm:$0xff]  }
 0x25e   :  { %2467 = vst [vmem:[#allocation13_spill] sm:$0xff] %v2241_v43  ;;  %2468 = vst [vmem:[#allocation14_spill] sm:$0xff] %v2244_v44 }
 0x25f   :  { %v642_v50 = vmul.f32 %v2207_v45, %v634_v47  ;;  %v2247_v47 = vld [vmem:[#allocation7 + $0x18] sm:$0xff]  }
 0x260   :  { %v1834_v28 = vpop.eup %1833  ;;  %2469 = vst [vmem:[#allocation15_spill] sm:$0xff] %v2247_v47 }
 0x261   :  { %v635_v31 = vmul.f32 %v1834_v28, %v629_v48  ;;  %v650_v29 = vadd.f32 %v2214_v30, %v642_v50  ;;  %v2250_v48 = vld [vmem:[#allocation7 + $0x50] sm:$0xff]   ;;  %v2257_v28 = vld [vmem:[#allocation7 + $0x88] sm:$0xff]  }
 0x262   :  { %2470 = vst [vmem:[#allocation16_spill] sm:$0xff] %v2250_v48  ;;  %v2253_v50 = vld [vmem:[#allocation7 + $0x10] sm:$0xff]   ;;  %1682 = vmatpush3.bf16.msra.mxu1 %v2257_v28 }
 0x263   :  { %v643_v46 = vmul.f32 %v2207_v45, %v635_v31  ;;  %v652_v33 = vmax.f32 %v650_v29, 0.0  ;;  %2471 = vst [vmem:[#allocation17_spill] sm:$0xff] %v2253_v50  ;;  %v2260_v31 = vld [vmem:[#allocation7 + $0x48] sm:$0xff]   ;;  %1683 = vmatprep.subr.bf16.mxu1 %v2461_v0  ;;  %v2266_v29 = vld [vmem:[#allocation7 + $0x80] sm:$0xff]  }
 0x264   :  { %2472 = vst [vmem:[#allocation18_spill] sm:$0xff] %v2260_v31 }
 0x265   :  { %v651_v32 = vadd.f32 %v2214_v30, %v643_v46  ;;  %v2262_v46 = vld [vmem:[#allocation7 + $0x8] sm:$0xff]  }
 0x266   :  { %2473 = vst [vmem:[#allocation19_spill] sm:$0xff] %v2262_v46  ;;  %1684 = vmatpush3.bf16.msra.mxu1 %v2266_v29 }
 0x267   :  { %v653_v34 = vmax.f32 %v651_v32, 0.0  ;;  %v2270_v32 = vld [vmem:[#allocation7 + $0x40] sm:$0xff]   ;;  %1695 = vmatprep.subr.bf16.mxu1 %v2461_v0 }
 0x268   :  { %2474 = vst [vmem:[#allocation20_spill] sm:$0xff] %v2270_v32 }
 0x269   :  { %v654_v36 = vpack.c.bf16 %v653_v34, %v652_v33  ;;  %v2272_v33 = vld [vmem:[#allocation7] sm:$0xff]   ;;  %v2280_v34 = vld [vmem:[%s2441_s0 + $0x8] sm:$0xff]  }
 0x26a   :  { %2475 = vst [vmem:[#allocation21_spill] sm:$0xff] %v2272_v33 }
 0x26b   :  { %1663 = vmatprep.subr.bf16.mxu0 %v654_v36 }
 0x26c   :  { %1664 = vmatpush3.bf16.msra.mxu0 %v654_v36 }
 0x26d   :  { %1509 = vmatprep.subr.bf16.mxu0 %v2219_v37 }
 0x26f   :  { %1666 = vmatmul.mubr.msk.bf16.vlgmr.msra.gmra.mxu0 %vm225_vm0, %v2033_v3 }
 0x270   :  { %1510 = vmatpush3.bf16.msra.mxu0 %v2221_v49 }
 0x271   :  { %1511 = vmatprep.subr.bf16.mxu0 %v2224_v35 }
 0x274   :  { %1512 = vmatpush3.bf16.msra.mxu0 %v2229_v39 }
 0x275   :  { %1513 = vmatprep.subr.bf16.mxu0 %v2232_v40 }
 0x278   :  { %1514 = vmatpush3.bf16.msra.mxu0 %v2235_v41 }
 0x279   :  { %1515 = vmatprep.subr.bf16.mxu0 %v2238_v42 }
 0x27c   :  { %1516 = vmatpush3.bf16.msra.mxu0 %v2241_v43 }
 0x27d   :  { %1517 = vmatprep.subr.bf16.mxu0 %v2244_v44 }
 0x280   :  { %1518 = vmatpush3.bf16.msra.mxu0 %v2247_v47 }
 0x281   :  { %1519 = vmatprep.subr.bf16.mxu0 %v2250_v48 }
 0x284   :  { %1520 = vmatpush3.bf16.msra.mxu0 %v2253_v50 }
 0x285   :  { %1521 = vmatprep.subr.bf16.mxu0 %v2260_v31 }
 0x288   :  { %1522 = vmatpush3.bf16.msra.mxu0 %v2262_v46  ;;  %v603_v46 = vpop.f32.mrf.mxu1 }
 0x289   :  { %1523 = vmatprep.subr.bf16.mxu0 %v2270_v32 }
 0x28a   :  { %v1661_v31 = vpop.f32.mrf.mxu1 }
 0x28c   :  { %1524 = vmatpush3.bf16.msra.mxu0 %v2272_v33  ;;  %v2283_v50 = vpop.f32.mrf.mxu1  ;;  %v2476_v33 = vmov 0.0  }
 0x28d   :  { %1689 = vmatprep.subr.bf16.mxu0 %v2280_v34 }
 0x28e   :  { %v1662_v48 = vpop.f32.mrf.mxu1 }
 0x32f   :  { %v1667_v47 = vpop.f32.mrf.mxu0 }
 0x331   :  { %v689_v44 = vpop.f32.mrf.mxu0 }
 0x333   :  { %v1668_v43 = vpop.f32.mrf.mxu0 }
 0x334   :  { %v705_v0 = vpack.c.bf16 %v1668_v43, %v1667_v47 }
 0x335   :  { %v692_v42 = vpop.f32.mrf.mxu0 }
 0x336   :  { %v704_v32 = vpack.c.bf16 %v692_v42, %v689_v44  ;;  %1686 = vmatmul.mubr.bf16.vlgmr.msra.gmra.mxu1 %v705_v0 }
 0x337   :  { %1696 = vmatpush3.bf16.msra.mxu1 %v2038_v4  ;;  %1711 = vmatprep.mubr.msk.bf16.mxu1 %vm1940_vm1, %v2476_v33 }
 0x338   :  { %888 = vmatprep.mubr.bf16.mxu0 %v704_v32  ;;  %1697 = vmatprep.subr.bf16.mxu1 %v2476_v33 }
 0x339   :  { %889 = vmatmul.mubr.bf16.vlgmr.msra.gmra.mxu0 %v654_v36 }
 0x33a   :  { %1690 = vmatpush3.bf16.msra.mxu0 %v2280_v34  ;;  %1691 = vmatprep.mubr.msk.bf16.mxu0 %vm225_vm0, %v2027_v2 }
 0x33b   :  { %1543 = vmatprep.subr.bf16.mxu0 %v2040_v5  ;;  %1698 = vmatpush3.bf16.msra.mxu1 %v2048_v7  ;;  %v2332_v7 = vld [vmem:[%s2450_s9] ss:$0 sm:$0xff] }
 0x33c   :  { %1699 = vmatprep.subr.bf16.mxu1 %v2476_v33 }
 0x33f   :  { %1700 = vmatpush3.bf16.msra.mxu1 %v2058_v10 }
 0x340   :  { %1701 = vmatprep.subr.bf16.mxu1 %v2476_v33 }
 0x341   :  { %1692 = vmatmul.mubr.msk.bf16.vlgmr.msra.gmra.mxu0 %vm225_vm0, %v2033_v3 }
 0x342   :  { %1544 = vmatpush3.bf16.msra.mxu0 %v2043_v6  ;;  %v2327_v6 = vld [vmem:[%s2446_s5] ss:$0 sm:$0xff] }
 0x343   :  { %1545 = vmatprep.subr.bf16.mxu0 %v2052_v8  ;;  %1702 = vmatpush3.bf16.msra.mxu1 %v2067_v13 }
 0x344   :  { %1703 = vmatprep.subr.bf16.mxu1 %v2476_v33 }
 0x346   :  { %1546 = vmatpush3.bf16.msra.mxu0 %v2054_v9 }
 0x347   :  { %1547 = vmatprep.subr.bf16.mxu0 %v2061_v11  ;;  %1704 = vmatpush3.bf16.msra.mxu1 %v2080_v17 }
 0x348   :  { %1705 = vmatprep.subr.bf16.mxu1 %v2476_v33 }
 0x34a   :  { %1548 = vmatpush3.bf16.msra.mxu0 %v2064_v12  ;;  %v604_v12 = vadd.f32 %v2327_v6, %v603_v46 }
 0x34b   :  { %1549 = vmatprep.subr.bf16.mxu0 %v2070_v14  ;;  %1706 = vmatpush3.bf16.msra.mxu1 %v2086_v19 }
 0x34c   :  { %1707 = vmatprep.subr.bf16.mxu1 %v2476_v33 }
 0x34e   :  { %1550 = vmatpush3.bf16.msra.mxu0 %v2074_v15 }
 0x34f   :  { %1551 = vmatprep.subr.bf16.mxu0 %v2077_v16  ;;  %1708 = vmatpush3.bf16.msra.mxu1 %v2100_v22 }
 0x350   :  { %1709 = vmatprep.subr.bf16.mxu1 %v2476_v33 }
 0x352   :  { %1552 = vmatpush3.bf16.msra.mxu0 %v2083_v18  ;;  %v607_v18 = vadd.f32 %v2327_v6, %v2283_v50 }
 0x353   :  { %1553 = vmatprep.subr.bf16.mxu0 %v2089_v20  ;;  %1710 = vmatpush3.bf16.msra.mxu1 %v2109_v25 }
 0x356   :  { %1554 = vmatpush3.bf16.msra.mxu0 %v2092_v21 }
 0x357   :  { %1555 = vmatprep.subr.bf16.mxu0 %v2103_v23 }
 0x35a   :  { %1556 = vmatpush3.bf16.msra.mxu0 %v2105_v24 }
 0x35b   :  { %1557 = vmatprep.subr.bf16.mxu0 %v2113_v26 }
 0x35e   :  { %1558 = vmatpush3.bf16.msra.mxu0 %v2115_v27 }
 0x35f   :  { %1715 = vmatprep.subr.bf16.mxu0 %v2476_v33 }
 0x3f6   :  { %v931_v0 = vpop.f32.mrf.mxu1 }
 0x3f8   :  { %v1687_v3 = vpop.f32.mrf.mxu1 }
 0x3f9   :  { %v1525_v4 = vpop.f32.mrf.mxu0 }
 0x3fa   :  { %v934_v5 = vpop.f32.mrf.mxu1 }
 0x3fb   :  { %v1526_v8 = vpop.f32.mrf.mxu0 }
 0x3fc   :  { %v1527_v9 = vadd.f32 %v1526_v8, %v1525_v4  ;;  %v1688_v10 = vpop.f32.mrf.mxu1 }
 0x3fd   :  { %v1528_v11 = vpop.f32.mrf.mxu0 }
 0x3fe   :  { %v891_v13 = vadd.f32 %v1527_v9, %v2332_v7 }
 0x3ff   :  { %v1529_v14 = vpop.f32.mrf.mxu0 }
 0x400   :  { %v932_v15 = vadd.f32 %v931_v0, %v891_v13  ;;  %v1530_v16 = vadd.f32 %v1529_v14, %v1528_v11 }
 0x401   :  { %v1693_v17 = vpop.f32.mrf.mxu0 }
 0x402   :  { %v894_v19 = vadd.f32 %v1530_v16, %v2332_v7  ;;  %v2339_v20 = vadd.f32 %v932_v15, %v604_v12 }
 0x403   :  { %v1027_v21 = vpop.f32.mrf.mxu0 }
 0x404   :  { %v935_v22 = vadd.f32 %v934_v5, %v894_v19  ;;  %v946_v42 = vmul.f32 %v2339_v20, %v2339_v20 }
 0x405   :  { %v1694_v23 = vpop.f32.mrf.mxu0 }
 0x406   :  { %v1043_v24 = vpack.c.bf16 %v1694_v23, %v1693_v17  ;;  %v2341_v25 = vadd.f32 %v935_v22, %v607_v18 }
 0x407   :  { %v1030_v26 = vpop.f32.mrf.mxu0 }
 0x408   :  { %v1042_v27 = vpack.c.bf16 %v1030_v26, %v1027_v21  ;;  %1712 = vmatmul.mubr.bf16.vlgmr.msra.gmra.mxu1 %v1043_v24  ;;  %v947_v43 = vmul.f32 %v2341_v25, %v2341_v25 }
 0x409   :  { %1737 = vmatprep.mubr.msk.bf16.mxu1 %vm225_vm0, %v2027_v2 }
 0x40a   :  { %1076 = vmatprep.mubr.bf16.mxu0 %v1042_v27 }
 0x40b   :  { %1077 = vmatmul.mubr.bf16.vlgmr.msra.gmra.mxu0 %v2280_v34 }
 0x40c   :  { %1716 = vmatpush3.bf16.msra.mxu0 %v2144_v51  ;;  %1731 = vmatprep.mubr.msk.bf16.mxu0 %vm1940_vm1, %v2476_v33 }
 0x40d   :  { %1717 = vmatprep.subr.bf16.mxu0 %v2476_v33 }
 0x410   :  { %1718 = vmatpush3.bf16.msra.mxu0 %v2147_v52 }
 0x411   :  { %1719 = vmatprep.subr.bf16.mxu0 %v2476_v33 }
 0x414   :  { %1720 = vmatpush3.bf16.msra.mxu0 %v2151_v53 }
 0x415   :  { %1721 = vmatprep.subr.bf16.mxu0 %v2476_v33 }
 0x418   :  { %1722 = vmatpush3.bf16.msra.mxu0 %v2155_v54 }
 0x419   :  { %1723 = vmatprep.subr.bf16.mxu0 %v2476_v33 }
 0x41c   :  { %1724 = vmatpush3.bf16.msra.mxu0 %v2159_v55 }
 0x41d   :  { %1725 = vmatprep.subr.bf16.mxu0 %v2476_v33 }
 0x420   :  { %1726 = vmatpush3.bf16.msra.mxu0 %v2163_v56 }
 0x421   :  { %1727 = vmatprep.subr.bf16.mxu0 %v2476_v33 }
 0x424   :  { %1728 = vmatpush3.bf16.msra.mxu0 %v2167_v57 }
 0x425   :  { %1729 = vmatprep.subr.bf16.mxu0 %v2476_v33 }
 0x428   :  { %1730 = vmatpush3.bf16.msra.mxu0 %v2171_v58 }
 0x429   :  { %1741 = vmatprep.subr.bf16.mxu0 %v2476_v33 }
 0x42b   :  { %1732 = vmatmul.mubr.bf16.vlgmr.msra.gmra.mxu0 %v2280_v34 }
 0x42c   :  { %1742 = vmatpush3.bf16.msra.mxu0 %v2175_v59  ;;  %1757 = vmatprep.mubr.msk.bf16.mxu0 %vm1940_vm1, %v2476_v33 }
 0x42d   :  { %1743 = vmatprep.subr.bf16.mxu0 %v2476_v33 }
 0x430   :  { %1744 = vmatpush3.bf16.msra.mxu0 %v2180_v60 }
 0x431   :  { %1745 = vmatprep.subr.bf16.mxu0 %v2476_v33 }
 0x434   :  { %1746 = vmatpush3.bf16.msra.mxu0 %v2186_v61 }
 0x435   :  { %1747 = vmatprep.subr.bf16.mxu0 %v2476_v33 }
 0x438   :  { %1748 = vmatpush3.bf16.msra.mxu0 %v2190_v62 }
 0x439   :  { %1749 = vmatprep.subr.bf16.mxu0 %v2476_v33 }
 0x43c   :  { %1750 = vmatpush3.bf16.msra.mxu0 %v2194_v63 }
 0x43d   :  { %1751 = vmatprep.subr.bf16.mxu0 %v2476_v33 }
 0x440   :  { %1752 = vmatpush3.bf16.msra.mxu0 %v2198_v1 }
 0x441   :  { %1753 = vmatprep.subr.bf16.mxu0 %v2476_v33 }
 0x444   :  { %1754 = vmatpush3.bf16.msra.mxu0 %v2257_v28 }
 0x445   :  { %1755 = vmatprep.subr.bf16.mxu0 %v2476_v33 }
 0x448   :  { %1756 = vmatpush3.bf16.msra.mxu0 %v2266_v29 }
 0x4c8   :  { %v1119_v2 = vpop.f32.mrf.mxu1 }
 0x4ca   :  { %v1713_v51 = vpop.f32.mrf.mxu1 }
 0x4cb   :  { %v1559_v52 = vpop.f32.mrf.mxu0 }
 0x4cc   :  { %v1122_v53 = vpop.f32.mrf.mxu1 }
 0x4cd   :  { %v1560_v54 = vpop.f32.mrf.mxu0 }
 0x4ce   :  { %v1561_v55 = vadd.f32 %v1560_v54, %v1559_v52  ;;  %v1714_v56 = vpop.f32.mrf.mxu1 }
 0x4cf   :  { %v1562_v57 = vpop.f32.mrf.mxu0 }
 0x4d0   :  { %v1079_v58 = vadd.f32 %v1561_v55, %v2130_v38  ;;  %v2397_v55 = vld [vmem:[%s2451_s10] ss:$0 sm:$0xff] }
 0x4d1   :  { %v1563_v59 = vpop.f32.mrf.mxu0 }
 0x4d2   :  { %v1564_v60 = vadd.f32 %v1563_v59, %v1562_v57  ;;  %v1120_v61 = vadd.f32 %v1119_v2, %v1079_v58  ;;  %v2403_v58 = vld [vmem:[%s2452_s11] ss:$0 sm:$0xff] }
 0x4d4   :  { %v1082_v62 = vadd.f32 %v1564_v60, %v2130_v38  ;;  %1167 = vadd.xlane.f32.xlu0 %v1120_v61  ;;  %v1173_v1 = vmul.f32 %v1120_v61, %v1120_v61 }
 0x4d6   :  { %v1123_v63 = vadd.f32 %v1122_v53, %v1082_v62 }
 0x4d8   :  { %1169 = vadd.xlane.f32.xlu1 %v1123_v63  ;;  %1175 = vadd.xlane.f32.xlu0 %v1173_v1  ;;  %v1174_v36 = vmul.f32 %v1123_v63, %v1123_v63 }
 0x4dc   :  { %1177 = vadd.xlane.f32.xlu1 %v1174_v36  ;;  %940 = vadd.xlane.f32.xlu0 %v2339_v20 }
 0x4e0   :  { %942 = vadd.xlane.f32.xlu1 %v2341_v25  ;;  %948 = vadd.xlane.f32.xlu0 %v946_v42  ;;  %v2478_v42 = vld [vmem:[#allocation13_spill] sm:$0xff] }
 0x4e4   :  { %950 = vadd.xlane.f32.xlu1 %v947_v43  ;;  %v2479_v43 = vld [vmem:[#allocation14_spill] sm:$0xff] }
 0x55d   :  { %v1168_v38 = vpop.xlane.xlu0 %1167 }
 0x55e   :  { %v1171_v44 = vmul.f32 0.0625, %v1168_v38  ;;  %v2480_v38 = vld [vmem:[#allocation15_spill] sm:$0xff] }
 0x560   :  { %v1181_v50 = vmul.f32 %v1171_v44, %v1171_v44  ;;  %v1185_v21 = vsub.f32 %v1120_v61, %v1171_v44  ;;  %v2481_v44 = vld [vmem:[#allocation16_spill] sm:$0xff] }
 0x561   :  { %v1170_v47 = vpop.xlane.xlu1 %1169  ;;  %v1176_v48 = vpop.xlane.xlu0 %1175 }
 0x562   :  { %v1172_v28 = vmul.f32 0.0625, %v1170_v47  ;;  %v1179_v31 = vmul.f32 0.0625, %v1176_v48  ;;  %v2482_v47 = vld [vmem:[#allocation17_spill] sm:$0xff] }
 0x564   :  { %v1183_v46 = vsub.f32 %v1179_v31, %v1181_v50  ;;  %v1182_v33 = vmul.f32 %v1172_v28, %v1172_v28  ;;  %v1186_v24 = vsub.f32 %v1123_v63, %v1172_v28 }
 0x565   :  { %v1178_v29 = vpop.xlane.xlu1 %1177  ;;  %v941_v32 = vpop.xlane.xlu0 %940 }
 0x566   :  { %v1187_v34 = vadd.f32 1e-06, %v1183_v46  ;;  %v1180_v0 = vmul.f32 0.0625, %v1178_v29  ;;  %v944_v3 = vmul.f32 0.0625, %v941_v32 }
 0x568   :  { %1835 = vrsqrt.f32 %v1187_v34  ;;  %v1184_v4 = vsub.f32 %v1180_v0, %v1182_v33  ;;  %v954_v10 = vmul.f32 %v944_v3, %v944_v3  ;;  %v958_v51 = vsub.f32 %v2339_v20, %v944_v3 }
 0x569   :  { %v943_v5 = vpop.xlane.xlu1 %942  ;;  %v949_v8 = vpop.xlane.xlu0 %948 }
 0x56a   :  { %v1188_v9 = vadd.f32 1e-06, %v1184_v4  ;;  %v945_v11 = vmul.f32 0.0625, %v943_v5  ;;  %v952_v12 = vmul.f32 0.0625, %v949_v8 }
 0x56c   :  { %1837 = vrsqrt.f32 %v1188_v9  ;;  %v956_v13 = vsub.f32 %v952_v12, %v954_v10  ;;  %v955_v15 = vmul.f32 %v945_v11, %v945_v11  ;;  %v959_v20 = vsub.f32 %v2341_v25, %v945_v11  ;;  %v1847_v25 = vld [vmem:[%s2442_s1 + $0x8] sm:$0xff]   ;;  %s1941_s1 = smov [#allocation8]  }
 0x56d   :  { %v951_v14 = vpop.xlane.xlu1 %950  ;;  %s1373_s15 = sshll.u32 %s1941_s1, 4  ;;  %s1374_s15 = int_to_ptr.vmem [resolvable:$true] %s1373_s15 }
 0x56e   :  { %v960_v16 = vadd.f32 1e-06, %v956_v13  ;;  %v953_v17 = vmul.f32 0.0625, %v951_v14  ;;  %s1908_s16 = scalar_lea.vmem %s1374_s15, 512  ;;  %p1913_p2 = scmp.lt.s32.totalorder %s1374_s15, %s1374_s15 }
 0x56f   :  { %p1909_p1 = scmp.ne.s32.totalorder %s1374_s15, %s1908_s16  ;;  %p1914_p3 = scmp.lt.s32.totalorder %s1908_s16, %s1908_s16 }
 0x570   :  { %1839 = vrsqrt.f32 %v960_v16  ;;  %v957_v18 = vsub.f32 %v953_v17, %v955_v15 }
 0x571   :  { %p1915_p4 = por %p1914_p3, %p1913_p2 }
 0x572   :  { %v961_v19 = vadd.f32 1e-06, %v957_v18 }
 0x573   :  { %p1916_p5 = pnand %p1915_p4, %p1909_p1 }
 0x574   :  { %1841 = vrsqrt.f32 %v961_v19 }
 0x575   :  { %v1836_v22 = vpop.eup %1835 }
 0x576   :  { %v1191_v23 = vmul.f32 %v1836_v22, %v1185_v21 }
 0x578   :  { %v1193_v26 = vmul.f32 %v2207_v45, %v1191_v23 }
 0x579   :  { %v1838_v27 = vpop.eup %1837 }
 0x57a   :  { %v1192_v2 = vmul.f32 %v1838_v27, %v1186_v24  ;;  %v1195_v53 = vadd.f32 %v2214_v30, %v1193_v26 }
 0x57c   :  { %v1194_v52 = vmul.f32 %v2207_v45, %v1192_v2  ;;  %v1197_v59 = vmax.f32 %v1195_v53, 0.0 }
 0x57d   :  { %v1840_v54 = vpop.eup %1839 }
 0x57e   :  { %v964_v56 = vmul.f32 %v1840_v54, %v958_v51  ;;  %v1196_v57 = vadd.f32 %v2214_v30, %v1194_v52 }
 0x580   :  { %v1198_v45 = vmax.f32 %v1196_v57, 0.0  ;;  %v972_v60 = vmul.f32 %v2397_v55, %v964_v56 }
 0x581   :  { %v1842_v61 = vpop.eup %1841 }
 0x582   :  { %v965_v62 = vmul.f32 %v1842_v61, %v959_v20  ;;  %v1199_v63 = vpack.c.bf16 %v1198_v45, %v1197_v59  ;;  %v980_v1 = vadd.f32 %v2403_v58, %v972_v60 }
 0x584   :  { %1735 = vmatprep.subr.bf16.mxu1 %v1199_v63  ;;  %v973_v36 = vmul.f32 %v2397_v55, %v965_v62  ;;  %982 = vst [vmem:[#allocation8] sm:$0xff] %v980_v1 }
 0x585   :  { %1736 = vmatpush3.bf16.msra.mxu1 %v1199_v63 }
 0x586   :  { %1586 = vmatprep.subr.bf16.mxu1 %v2219_v37  ;;  %v981_v30 = vadd.f32 %v2403_v58, %v973_v36  ;;  %v2477_v37 = vld [vmem:[#allocation12_spill] sm:$0xff] }
 0x588   :  { %1738 = vmatmul.mubr.msk.bf16.vlgmr.msra.gmra.mxu1 %vm225_vm0, %v1847_v25  ;;  %983 = vst [vmem:[#allocation8 + $0x8] sm:$0xff] %v981_v30 }
 0x589   :  { %1587 = vmatpush3.bf16.msra.mxu1 %v2221_v49  ;;  %v2483_v49 = vld [vmem:[#allocation18_spill] sm:$0xff] }
 0x58a   :  { %1588 = vmatprep.subr.bf16.mxu1 %v2224_v35  ;;  %v2484_v35 = vld [vmem:[#allocation19_spill] sm:$0xff] }
 0x58d   :  { %1589 = vmatpush3.bf16.msra.mxu1 %v2229_v39  ;;  %v2485_v39 = vld [vmem:[#allocation20_spill] sm:$0xff] }
 0x58e   :  { %1590 = vmatprep.subr.bf16.mxu1 %v2232_v40  ;;  %v2486_v40 = vld [vmem:[#allocation21_spill] sm:$0xff] }
 0x591   :  { %1591 = vmatpush3.bf16.msra.mxu1 %v2235_v41  ;;  %v1160_v41 = vpop.f32.mrf.mxu0 }
 0x592   :  { %1592 = vmatprep.subr.bf16.mxu1 %v2477_v37  ;;  %v1161_v14 = vadd.f32 %v2327_v6, %v1160_v41 }
 0x593   :  { %v1733_v48 = vpop.f32.mrf.mxu0 }
 0x595   :  { %1593 = vmatpush3.bf16.msra.mxu1 %v2478_v42  ;;  %v1163_v50 = vpop.f32.mrf.mxu0 }
 0x596   :  { %1594 = vmatprep.subr.bf16.mxu1 %v2479_v43  ;;  %v1164_v19 = vadd.f32 %v2327_v6, %v1163_v50 }
 0x597   :  { %v1734_v28 = vpop.f32.mrf.mxu0 }
 0x599   :  { %1595 = vmatpush3.bf16.msra.mxu1 %v2480_v38 }
 0x59a   :  { %1596 = vmatprep.subr.bf16.mxu1 %v2481_v44 }
 0x59d   :  { %1597 = vmatpush3.bf16.msra.mxu1 %v2482_v47 }
 0x59e   :  { %1598 = vmatprep.subr.bf16.mxu1 %v2483_v49 }
 0x5a1   :  { %1599 = vmatpush3.bf16.msra.mxu1 %v2484_v35 }
 0x5a2   :  { %1600 = vmatprep.subr.bf16.mxu1 %v2485_v39 }
 0x5a5   :  { %1601 = vmatpush3.bf16.msra.mxu1 %v2486_v40 }
 0x648   :  { %v1739_v31 = vpop.f32.mrf.mxu1 }
 0x64a   :  { %v1234_v46 = vpop.f32.mrf.mxu1 }
 0x64c   :  { %v1740_v29 = vpop.f32.mrf.mxu1 }
 0x64d   :  { %v1250_v32 = vpack.c.bf16 %v1740_v29, %v1739_v31 }
 0x64e   :  { %v1237_v33 = vpop.f32.mrf.mxu1 }
 0x64f   :  { %v1249_v34 = vpack.c.bf16 %v1237_v33, %v1234_v46  ;;  %1758 = vmatmul.mubr.bf16.vlgmr.msra.gmra.mxu0 %v1250_v32 }
 0x651   :  { %1283 = vmatprep.mubr.bf16.mxu1 %v1249_v34 }
 0x652   :  { %1284 = vmatmul.mubr.bf16.vlgmr.msra.gmra.mxu1 %v1199_v63 }
 0x70f   :  { %v1326_v0 = vpop.f32.mrf.mxu0 }
 0x711   :  { %v1759_v3 = vpop.f32.mrf.mxu0 }
 0x712   :  { %v1602_v4 = vpop.f32.mrf.mxu1 }
 0x713   :  { %v1329_v5 = vpop.f32.mrf.mxu0 }
 0x714   :  { %v1603_v8 = vpop.f32.mrf.mxu1 }
 0x715   :  { %v1604_v9 = vadd.f32 %v1603_v8, %v1602_v4  ;;  %v1760_v10 = vpop.f32.mrf.mxu0 }
 0x716   :  { %v1605_v11 = vpop.f32.mrf.mxu1 }
 0x717   :  { %v1286_v12 = vadd.f32 %v1604_v9, %v2332_v7 }
 0x718   :  { %v1606_v13 = vpop.f32.mrf.mxu1 }
 0x719   :  { %v1327_v15 = vadd.f32 %v1326_v0, %v1286_v12  ;;  %v1607_v16 = vadd.f32 %v1606_v13, %v1605_v11 }
 0x71b   :  { %v1289_v17 = vadd.f32 %v1607_v16, %v2332_v7  ;;  %v1333_v18 = vadd.f32 %v1327_v15, %v1161_v14 }
 0x71d   :  { %v1330_v21 = vadd.f32 %v1329_v5, %v1289_v17  ;;  %1335 = vadd.xlane.f32.xlu0 %v1333_v18  ;;  %v1341_v23 = vmul.f32 %v1333_v18, %v1333_v18 }
 0x71f   :  { %v1334_v22 = vadd.f32 %v1330_v21, %v1164_v19 }
 0x721   :  { %1337 = vadd.xlane.f32.xlu1 %v1334_v22  ;;  %1343 = vadd.xlane.f32.xlu0 %v1341_v23  ;;  %v1342_v24 = vmul.f32 %v1334_v22, %v1334_v22 }
 0x725   :  { %1345 = vadd.xlane.f32.xlu1 %v1342_v24 }
 0x7a6   :  { %v1336_v26 = vpop.xlane.xlu0 %1335 }
 0x7a7   :  { %v1339_v27 = vmul.f32 0.0625, %v1336_v26 }
 0x7a9   :  { %v1349_v52 = vmul.f32 %v1339_v27, %v1339_v27  ;;  %v1353_v60 = vsub.f32 %v1333_v18, %v1339_v27 }
 0x7aa   :  { %v1338_v2 = vpop.xlane.xlu1 %1337  ;;  %v1344_v51 = vpop.xlane.xlu0 %1343 }
 0x7ab   :  { %v1340_v53 = vmul.f32 0.0625, %v1338_v2  ;;  %v1347_v54 = vmul.f32 0.0625, %v1344_v51 }
 0x7ad   :  { %v1351_v56 = vsub.f32 %v1347_v54, %v1349_v52  ;;  %v1350_v57 = vmul.f32 %v1340_v53, %v1340_v53  ;;  %v1354_v63 = vsub.f32 %v1334_v22, %v1340_v53 }
 0x7ae   :  { %v1346_v7 = vpop.xlane.xlu1 %1345 }
 0x7af   :  { %v1355_v20 = vadd.f32 1e-06, %v1351_v56  ;;  %v1348_v6 = vmul.f32 0.0625, %v1346_v7 }
 0x7b1   :  { %1843 = vrsqrt.f32 %v1355_v20  ;;  %v1352_v59 = vsub.f32 %v1348_v6, %v1350_v57 }
 0x7b3   :  { %v1356_v45 = vadd.f32 1e-06, %v1352_v59 }
 0x7b5   :  { %1845 = vrsqrt.f32 %v1356_v45 }
 0x7be   :  { %v1844_v61 = vpop.eup %1843 }
 0x7bf   :  { %v1359_v62 = vmul.f32 %v1844_v61, %v1353_v60 }
 0x7c1   :  { %v1361_v1 = vmul.f32 %v2397_v55, %v1359_v62 }
 0x7c2   :  { %v1846_v36 = vpop.eup %1845 }
 0x7c3   :  { %v1360_v30 = vmul.f32 %v1846_v36, %v1354_v63  ;;  %v1363_v25 = vadd.f32 %v2403_v58, %v1361_v1 }
 0x7c5   :  { %v1362_v37 = vmul.f32 %v2397_v55, %v1360_v30  ;;  %1366 = vst [vmem:[#allocation8 + $0x10] sm:$0xff] %v1363_v25 }
 0x7c7   :  { %v1364_v42 = vadd.f32 %v2403_v58, %v1362_v37 }
 0x7c9   :  { %1367 = vst [vmem:[#allocation8 + $0x18] sm:$0xff] %v1364_v42 }
 0x7ca   :  { %1919 = shalt.err (!%p1916_p5)
}
 0x7cb   :  { %s1942_s17 = smov 128   ;;  %s1943_s4 = smov 8  }
 0x7cc   :  { %1379 = dma.vmem_to_hbm [thread:$0]  %s1374_s15, 512, %s2453_s12, [#allocation4], %s1942_s17, %s1942_s17, %s1943_s4  }
 0x7cd   :  { %1932 = dma.done.wait [#allocation4], 512  }
 0x7ce   :  { %1933 = vsyncadd [#allocation4], 4294966784 }
 0x7cf   :  { %1383 = vsyncpa [#allocation3], 1 }
 0x7d0   :  { %1384 = vsyncpa [#allocation6], 1 }
 0x7d1   :  { %1385 = vsyncpa [#allocation4], 1 }

// kernel: tpu_custom_call.1
= control target key start
LH: loop header
LB: loop body
LE: loop exit
PB: predicated region body
PF: predicated region fallthrough
CT: control target
= control target key end

     0   :  { %17 = vsyncpa [#allocation3], 0  ;;  %s2441_s0 = inlined_call_operand.vmem [shape: bf16[2,16,128], index: 0, kind: input, shape index: {}]   ;;  %s2442_s1 = inlined_call_operand.vmem [shape: bf16[32,16], index: 1, kind: input, shape index: {}]   ;;  %s2443_s2 = inlined_call_operand.hbm [shape: bf16[384,128], index: 2, kind: input, shape index: {}]   ;;  %s2444_s3 = inlined_call_operand.vmem [shape: f32[1,128], index: 3, kind: input, shape index: {}]   ;;  %s2445_s4 = inlined_call_operand.hbm [shape: bf16[128,128], index: 4, kind: input, shape index: {}]   ;;  %s2446_s5 = inlined_call_operand.vmem [shape: f32[1,128], index: 5, kind: input, shape index: {}]   ;;  %s2447_s6 = inlined_call_operand.vmem [shape: f32[1,128], index: 6, kind: input, shape index: {}]   ;;  %s2448_s7 = inlined_call_operand.vmem [shape: f32[1,128], index: 7, kind: input, shape index: {}]   ;;  %s2449_s8 = inlined_call_operand.hbm [shape: bf16[384,128], index: 8, kind: input, shape index: {}]   ;;  %s2450_s9 = inlined_call_operand.vmem [shape: f32[1,128], index: 9, kind: input, shape index: {}]   ;;  %s2451_s10 = inlined_call_operand.vmem [shape: f32[1,128], index: 10, kind: input, shape index: {}]   ;;  %s2452_s11 = inlined_call_operand.vmem [shape: f32[1,128], index: 11, kind: input, shape index: {}]   ;;  %s2453_s12 = inlined_call_operand.hbm [shape: f32[2,16,128], index: 12, kind: output, shape index: {}]  }
   0x1   :  { %18 = vsyncpa [#allocation6], 0 }
   0x2   :  { %19 = vsyncpa [#allocation4], 0  ;;  %s1934_s21 = smov [#allocation5]   ;;  %s1935_s23 = smov [#allocation2]  }
   0x3   :  { %s43_s22 = sshll.u32 %s1934_s21, 4  ;;  %s29_s24 = sshll.u32 %s1935_s23, 4  ;;  %s44_s22 = int_to_ptr.vmem [resolvable:$true] %s43_s22  ;;  %s30_s24 = int_to_ptr.vmem [resolvable:$true] %s29_s24 }
   0x4   :  { %s1856_s25 = scalar_lea.vmem %s44_s22, 1024  ;;  %p1861_p1 = scmp.lt.s32.totalorder %s44_s22, %s44_s22 }
   0x5   :  { %p1857_p0 = scmp.ne.s32.totalorder %s44_s22, %s1856_s25  ;;  %p1862_p2 = scmp.lt.s32.totalorder %s1856_s25, %s1856_s25 }
   0x7   :  { %p1863_p3 = por %p1862_p2, %p1861_p1 }
   0x9   :  { %p1864_p4 = pnand %p1863_p3, %p1857_p0 }
   0xb   :  { %1867 = shalt.err (!%p1864_p4)
}
   0xc   :  { %s1936_s26 = smov 64   ;;  %s1937_s27 = smov 4  }
   0xd   :  { %49 = dma.hbm_to_vmem [thread:$0]  %s2445_s4, 1024, %s44_s22, [#allocation6], %s1936_s26, %s1936_s26, %s1937_s27  }
   0xe   :  { %s1876_s30 = scalar_lea.vmem %s30_s24, 3072  ;;  %p1881_p6 = scmp.lt.s32.totalorder %s30_s24, %s30_s24 }
   0xf   :  { %p1877_p5 = scmp.ne.s32.totalorder %s30_s24, %s1876_s30  ;;  %p1882_p7 = scmp.lt.s32.totalorder %s1876_s30, %s1876_s30 }
  0x11   :  { %p1883_p8 = por %p1882_p7, %p1881_p6 }
  0x13   :  { %p1884_p9 = pnand %p1883_p8, %p1877_p5 }
  0x15   :  { %1887 = shalt.err (!%p1884_p9)
}
  0x16   :  { %35 = dma.hbm_to_vmem [thread:$0]  %s2443_s2, 3072, %s30_s24, [#allocation3], %s1936_s26, %s1936_s26, %s1937_s27  }
  0x17   :  { %s1938_s15 = smov [#allocation7]  }
  0x18   :  { %s61_s16 = sshll.u32 %s1938_s15, 4  ;;  %s62_s16 = int_to_ptr.vmem [resolvable:$true] %s61_s16 }
  0x19   :  { %s1896_s17 = scalar_lea.vmem %s62_s16, 3072  ;;  %p1901_p11 = scmp.lt.s32.totalorder %s62_s16, %s62_s16 }
  0x1a   :  { %p1897_p10 = scmp.ne.s32.totalorder %s62_s16, %s1896_s17  ;;  %p1902_p12 = scmp.lt.s32.totalorder %s1896_s17, %s1896_s17 }
  0x1c   :  { %p1903_p13 = por %p1902_p12, %p1901_p11 }
  0x1e   :  { %p1904_p0 = pnand %p1903_p13, %p1897_p10 }
  0x20   :  { %1907 = shalt.err (!%p1904_p0)
}
  0x21   :  { %67 = dma.hbm_to_vmem [thread:$0]  %s2449_s8, 3072, %s62_s16, [#allocation6], %s1936_s26, %s1936_s26, %s1937_s27  }
  0x22   :  { %1928 = dma.done.wait [#allocation3], 3072  }
  0x23   :  { %1929 = vsyncadd [#allocation3], 4294964224 }
  0x24   :  { %1930 = dma.done.wait [#allocation6], 4096  }
  0x25   :  { %1931 = vsyncadd [#allocation6], 4294963200  ;;  %v2461_v0 = vmov 0.0   ;;  %v2022_v1 = vld [vmem:[%s2441_s0] sm:$0xff]   ;;  %vm225_vm0 = vcmask 130048   ;;  %v2033_v3 = vld [vmem:[%s2442_s1 + $0x8] sm:$0xff]  }
  0x26   :  { %1623 = vmatprep.subr.bf16.mxu0 %v2461_v0  ;;  %v2027_v2 = vld [vmem:[%s2442_s1] sm:$0xff]   ;;  %1617 = vmatprep.subr.bf16.mxu1 %v2022_v1  ;;  %v2038_v4 = vld [vmem:[#allocation2 + $0xb8] sm:$0xff]   ;;  %v2048_v7 = vld [vmem:[#allocation2 + $0xb0] sm:$0xff]   ;;  %vm1940_vm1 = vmmov 0  }
  0x27   :  { %1618 = vmatpush3.bf16.msra.mxu1 %v2022_v1  ;;  %1619 = vmatprep.mubr.msk.bf16.mxu1 %vm225_vm0, %v2027_v2  ;;  %v2040_v5 = vld [vmem:[#allocation2 + $0x78] sm:$0xff]   ;;  %v2052_v8 = vld [vmem:[#allocation2 + $0x70] sm:$0xff]   ;;  %v2058_v10 = vld [vmem:[#allocation2 + $0xa8] sm:$0xff]  }
  0x28   :  { %1624 = vmatpush3.bf16.msra.mxu0 %v2038_v4  ;;  %v2043_v6 = vld [vmem:[#allocation2 + $0x38] sm:$0xff]   ;;  %1466 = vmatprep.subr.bf16.mxu1 %v2040_v5  ;;  %v2054_v9 = vld [vmem:[#allocation2 + $0x30] sm:$0xff]   ;;  %v2061_v11 = vld [vmem:[#allocation2 + $0x68] sm:$0xff]  }
  0x29   :  { %1625 = vmatprep.subr.bf16.mxu0 %v2461_v0  ;;  %v2064_v12 = vld [vmem:[#allocation2 + $0x28] sm:$0xff]   ;;  %v2067_v13 = vld [vmem:[#allocation2 + $0xa0] sm:$0xff]   ;;  %v2077_v16 = vld [vmem:[#allocation2 + $0x58] sm:$0xff]   ;;  %1639 = vmatprep.mubr.msk.bf16.mxu0 %vm1940_vm1, %v2461_v0 }
  0x2a   :  { %1620 = vmatmul.mubr.msk.bf16.vlgmr.msra.gmra.mxu1 %vm225_vm0, %v2033_v3  ;;  %v2070_v14 = vld [vmem:[#allocation2 + $0x60] sm:$0xff]   ;;  %v2080_v17 = vld [vmem:[#allocation2 + $0x98] sm:$0xff]   ;;  %v2086_v19 = vld [vmem:[#allocation2 + $0x90] sm:$0xff]  }
  0x2b   :  { %1467 = vmatpush3.bf16.msra.mxu1 %v2043_v6  ;;  %v2074_v15 = vld [vmem:[#allocation2 + $0x20] sm:$0xff]   ;;  %v2083_v18 = vld [vmem:[#allocation2 + $0x18] sm:$0xff]   ;;  %v2089_v20 = vld [vmem:[#allocation2 + $0x50] sm:$0xff]  }
  0x2c   :  { %1626 = vmatpush3.bf16.msra.mxu0 %v2048_v7  ;;  %1468 = vmatprep.subr.bf16.mxu1 %v2052_v8  ;;  %v2092_v21 = vld [vmem:[#allocation2 + $0x10] sm:$0xff]   ;;  %v2100_v22 = vld [vmem:[#allocation2 + $0x88] sm:$0xff]   ;;  %v2109_v25 = vld [vmem:[#allocation2 + $0x80] sm:$0xff]  }
  0x2d   :  { %1627 = vmatprep.subr.bf16.mxu0 %v2461_v0  ;;  %v2103_v23 = vld [vmem:[#allocation2 + $0x48] sm:$0xff]   ;;  %v2113_v26 = vld [vmem:[#allocation2 + $0x40] sm:$0xff]   ;;  %v2144_v51 = vld [vmem:[#allocation5 + $0x38] sm:$0xff]  }
  0x2e   :  { %v2105_v24 = vld [vmem:[#allocation2 + $0x8] sm:$0xff]   ;;  %v2115_v27 = vld [vmem:[#allocation2] sm:$0xff]   ;;  %v2147_v52 = vld [vmem:[#allocation5 + $0x30] sm:$0xff]  }
  0x2f   :  { %1469 = vmatpush3.bf16.msra.mxu1 %v2054_v9  ;;  %v2130_v38 = vld [vmem:[%s2444_s3] ss:$0 sm:$0xff]  ;;  %v2151_v53 = vld [vmem:[#allocation5 + $0x28] sm:$0xff]   ;;  %v2159_v55 = vld [vmem:[#allocation5 + $0x18] sm:$0xff]  }
  0x30   :  { %1470 = vmatprep.subr.bf16.mxu1 %v2061_v11  ;;  %1628 = vmatpush3.bf16.msra.mxu0 %v2058_v10  ;;  %v2155_v54 = vld [vmem:[#allocation5 + $0x20] sm:$0xff]   ;;  %v2163_v56 = vld [vmem:[#allocation5 + $0x10] sm:$0xff]   ;;  %v2167_v57 = vld [vmem:[#allocation5 + $0x8] sm:$0xff]  }
  0x31   :  { %1629 = vmatprep.subr.bf16.mxu0 %v2461_v0  ;;  %v2171_v58 = vld [vmem:[#allocation5] sm:$0xff]   ;;  %v2175_v59 = vld [vmem:[#allocation7 + $0xb8] sm:$0xff]   ;;  %v2180_v60 = vld [vmem:[#allocation7 + $0xb0] sm:$0xff]  }
  0x32   :  { %v2186_v61 = vld [vmem:[#allocation7 + $0xa8] sm:$0xff]   ;;  %v2190_v62 = vld [vmem:[#allocation7 + $0xa0] sm:$0xff]   ;;  %v2194_v63 = vld [vmem:[#allocation7 + $0x98] sm:$0xff]  }
  0x33   :  { %1471 = vmatpush3.bf16.msra.mxu1 %v2064_v12 }
  0x34   :  { %1472 = vmatprep.subr.bf16.mxu1 %v2070_v14  ;;  %1630 = vmatpush3.bf16.msra.mxu0 %v2067_v13 }
  0x35   :  { %1631 = vmatprep.subr.bf16.mxu0 %v2461_v0 }
  0x37   :  { %1473 = vmatpush3.bf16.msra.mxu1 %v2074_v15 }
  0x38   :  { %1474 = vmatprep.subr.bf16.mxu1 %v2077_v16  ;;  %1632 = vmatpush3.bf16.msra.mxu0 %v2080_v17 }
  0x39   :  { %1633 = vmatprep.subr.bf16.mxu0 %v2461_v0 }
  0x3b   :  { %1475 = vmatpush3.bf16.msra.mxu1 %v2083_v18 }
  0x3c   :  { %1476 = vmatprep.subr.bf16.mxu1 %v2089_v20  ;;  %1634 = vmatpush3.bf16.msra.mxu0 %v2086_v19 }
  0x3d   :  { %1635 = vmatprep.subr.bf16.mxu0 %v2461_v0 }
  0x3f   :  { %1477 = vmatpush3.bf16.msra.mxu1 %v2092_v21 }
  0x40   :  { %1636 = vmatpush3.bf16.msra.mxu0 %v2100_v22  ;;  %1478 = vmatprep.subr.bf16.mxu1 %v2103_v23 }
  0x41   :  { %1637 = vmatprep.subr.bf16.mxu0 %v2461_v0 }
  0x43   :  { %1479 = vmatpush3.bf16.msra.mxu1 %v2105_v24 }
  0x44   :  { %1638 = vmatpush3.bf16.msra.mxu0 %v2109_v25  ;;  %1480 = vmatprep.subr.bf16.mxu1 %v2113_v26 }
  0x47   :  { %1481 = vmatpush3.bf16.msra.mxu1 %v2115_v27 }
  0x48   :  { %1643 = vmatprep.subr.bf16.mxu1 %v2461_v0 }
  0xea   :  { %v1621_v28 = vpop.f32.mrf.mxu1 }
  0xec   :  { %v266_v29 = vpop.f32.mrf.mxu1 }
  0xee   :  { %v1622_v30 = vpop.f32.mrf.mxu1 }
  0xef   :  { %v282_v31 = vpack.c.bf16 %v1622_v30, %v1621_v28 }
  0xf0   :  { %v269_v32 = vpop.f32.mrf.mxu1 }
  0xf1   :  { %v281_v33 = vpack.c.bf16 %v269_v32, %v266_v29  ;;  %1640 = vmatmul.mubr.bf16.vlgmr.msra.gmra.mxu0 %v282_v31 }
  0xf2   :  { %1665 = vmatprep.mubr.msk.bf16.mxu0 %vm225_vm0, %v2027_v2 }
  0xf3   :  { %465 = vmatprep.mubr.bf16.mxu1 %v281_v33 }
  0xf4   :  { %466 = vmatmul.mubr.bf16.vlgmr.msra.gmra.mxu1 %v2022_v1 }
  0xf5   :  { %1659 = vmatprep.mubr.msk.bf16.mxu1 %vm1940_vm1, %v2461_v0  ;;  %1644 = vmatpush3.bf16.msra.mxu1 %v2144_v51 }
  0xf6   :  { %1645 = vmatprep.subr.bf16.mxu1 %v2461_v0 }
  0xf9   :  { %1646 = vmatpush3.bf16.msra.mxu1 %v2147_v52 }
  0xfa   :  { %1647 = vmatprep.subr.bf16.mxu1 %v2461_v0 }
  0xfd   :  { %1648 = vmatpush3.bf16.msra.mxu1 %v2151_v53 }
  0xfe   :  { %1649 = vmatprep.subr.bf16.mxu1 %v2461_v0 }
 0x101   :  { %1650 = vmatpush3.bf16.msra.mxu1 %v2155_v54 }
 0x102   :  { %1651 = vmatprep.subr.bf16.mxu1 %v2461_v0 }
 0x105   :  { %1652 = vmatpush3.bf16.msra.mxu1 %v2159_v55 }
 0x106   :  { %1653 = vmatprep.subr.bf16.mxu1 %v2461_v0 }
 0x109   :  { %1654 = vmatpush3.bf16.msra.mxu1 %v2163_v56 }
 0x10a   :  { %1655 = vmatprep.subr.bf16.mxu1 %v2461_v0 }
 0x10d   :  { %1656 = vmatpush3.bf16.msra.mxu1 %v2167_v57 }
 0x10e   :  { %1657 = vmatprep.subr.bf16.mxu1 %v2461_v0 }
 0x111   :  { %1658 = vmatpush3.bf16.msra.mxu1 %v2171_v58 }
 0x112   :  { %1669 = vmatprep.subr.bf16.mxu1 %v2461_v0 }
 0x114   :  { %1660 = vmatmul.mubr.bf16.vlgmr.msra.gmra.mxu1 %v2022_v1  ;;  %v2198_v1 = vld [vmem:[#allocation7 + $0x90] sm:$0xff]  }
 0x115   :  { %1670 = vmatpush3.bf16.msra.mxu1 %v2175_v59  ;;  %1685 = vmatprep.mubr.msk.bf16.mxu1 %vm1940_vm1, %v2461_v0 }
 0x116   :  { %1671 = vmatprep.subr.bf16.mxu1 %v2461_v0 }
 0x119   :  { %1672 = vmatpush3.bf16.msra.mxu1 %v2180_v60 }
 0x11a   :  { %1673 = vmatprep.subr.bf16.mxu1 %v2461_v0 }
 0x11d   :  { %1674 = vmatpush3.bf16.msra.mxu1 %v2186_v61 }
 0x11e   :  { %1675 = vmatprep.subr.bf16.mxu1 %v2461_v0 }
 0x121   :  { %1676 = vmatpush3.bf16.msra.mxu1 %v2190_v62 }
 0x122   :  { %1677 = vmatprep.subr.bf16.mxu1 %v2461_v0 }
 0x125   :  { %1678 = vmatpush3.bf16.msra.mxu1 %v2194_v63 }
 0x126   :  { %1679 = vmatprep.subr.bf16.mxu1 %v2461_v0 }
 0x129   :  { %1680 = vmatpush3.bf16.msra.mxu1 %v2198_v1 }
 0x12a   :  { %1681 = vmatprep.subr.bf16.mxu1 %v2461_v0 }
 0x1b1   :  { %v508_v34 = vpop.f32.mrf.mxu0 }
 0x1b3   :  { %v1641_v35 = vpop.f32.mrf.mxu0 }
 0x1b4   :  { %v1482_v36 = vpop.f32.mrf.mxu1 }
 0x1b5   :  { %v511_v37 = vpop.f32.mrf.mxu0 }
 0x1b6   :  { %v1483_v39 = vpop.f32.mrf.mxu1 }
 0x1b7   :  { %v1484_v40 = vadd.f32 %v1483_v39, %v1482_v36  ;;  %v1642_v41 = vpop.f32.mrf.mxu0 }
 0x1b8   :  { %v1485_v42 = vpop.f32.mrf.mxu1 }
 0x1b9   :  { %v468_v43 = vadd.f32 %v1484_v40, %v2130_v38 }
 0x1ba   :  { %v1486_v44 = vpop.f32.mrf.mxu1 }
 0x1bb   :  { %v1487_v45 = vadd.f32 %v1486_v44, %v1485_v42  ;;  %v2133_v46 = vadd.f32 %v508_v34, %v468_v43 }
 0x1bd   :  { %v471_v47 = vadd.f32 %v1487_v45, %v2130_v38  ;;  %610 = vadd.xlane.f32.xlu0 %v2133_v46  ;;  %v616_v48 = vmul.f32 %v2133_v46, %v2133_v46  ;;  %v2207_v45 = vld [vmem:[%s2447_s6] ss:$0 sm:$0xff] }
 0x1bf   :  { %618 = vadd.xlane.f32.xlu1 %v616_v48  ;;  %v2139_v49 = vadd.f32 %v511_v37, %v471_v47 }
 0x1c1   :  { %612 = vadd.xlane.f32.xlu0 %v2139_v49  ;;  %v617_v50 = vmul.f32 %v2139_v49, %v2139_v49 }
 0x1c3   :  { %620 = vadd.xlane.f32.xlu1 %v617_v50 }
 0x246   :  { %v611_v28 = vpop.xlane.xlu0 %610 }
 0x247   :  { %v614_v29 = vmul.f32 0.0625, %v611_v28 }
 0x248   :  { %v619_v30 = vpop.xlane.xlu1 %618 }
 0x249   :  { %v624_v31 = vmul.f32 %v614_v29, %v614_v29  ;;  %v622_v32 = vmul.f32 0.0625, %v619_v30  ;;  %v628_v43 = vsub.f32 %v2133_v46, %v614_v29  ;;  %v2214_v30 = vld [vmem:[%s2448_s7] ss:$0 sm:$0xff] }
 0x24a   :  { %v613_v33 = vpop.xlane.xlu0 %612 }
 0x24b   :  { %v626_v34 = vsub.f32 %v622_v32, %v624_v31  ;;  %v615_v35 = vmul.f32 0.0625, %v613_v33 }
 0x24c   :  { %v621_v36 = vpop.xlane.xlu1 %620 }
 0x24d   :  { %v630_v37 = vadd.f32 1e-06, %v626_v34  ;;  %v625_v39 = vmul.f32 %v615_v35, %v615_v35  ;;  %v623_v40 = vmul.f32 0.0625, %v621_v36  ;;  %v629_v48 = vsub.f32 %v2139_v49, %v615_v35  ;;  %v2221_v49 = vld [vmem:[#allocation7 + $0x38] sm:$0xff]   ;;  %v2224_v35 = vld [vmem:[#allocation7 + $0x70] sm:$0xff]  }
 0x24f   :  { %1831 = vrsqrt.f32 %v630_v37  ;;  %v627_v41 = vsub.f32 %v623_v40, %v625_v39  ;;  %v2219_v37 = vld [vmem:[#allocation7 + $0x78] sm:$0xff]   ;;  %v2229_v39 = vld [vmem:[#allocation7 + $0x30] sm:$0xff]   ;;  %v2232_v40 = vld [vmem:[#allocation7 + $0x68] sm:$0xff]  }
 0x251   :  { %v631_v42 = vadd.f32 1e-06, %v627_v41  ;;  %v2235_v41 = vld [vmem:[#allocation7 + $0x28] sm:$0xff]  }
 0x253   :  { %1833 = vrsqrt.f32 %v631_v42  ;;  %v2238_v42 = vld [vmem:[#allocation7 + $0x60] sm:$0xff]  }
 0x254   :  { %2466 = vst [vmem:[#allocation12_spill] sm:$0xff] %v2238_v42 }
 0x25c   :  { %v1832_v44 = vpop.eup %1831 }
 0x25d   :  { %v634_v47 = vmul.f32 %v1832_v44, %v628_v43  ;;  %v2241_v43 = vld [vmem:[#allocation7 + $0x20] sm:$0xff]   ;;  %v2244_v44 = vld [vmem:[#allocation7 + $0x58] sm:$0xff]  }
 0x25e   :  { %2467 = vst [vmem:[#allocation13_spill] sm:$0xff] %v2241_v43  ;;  %2468 = vst [vmem:[#allocation14_spill] sm:$0xff] %v2244_v44 }
 0x25f   :  { %v642_v50 = vmul.f32 %v2207_v45, %v634_v47  ;;  %v2247_v47 = vld [vmem:[#allocation7 + $0x18] sm:$0xff]  }
 0x260   :  { %v1834_v28 = vpop.eup %1833  ;;  %2469 = vst [vmem:[#allocation15_spill] sm:$0xff] %v2247_v47 }
 0x261   :  { %v635_v31 = vmul.f32 %v1834_v28, %v629_v48  ;;  %v650_v29 = vadd.f32 %v2214_v30, %v642_v50  ;;  %v2250_v48 = vld [vmem:[#allocation7 + $0x50] sm:$0xff]   ;;  %v2257_v28 = vld [vmem:[#allocation7 + $0x88] sm:$0xff]  }
 0x262   :  { %2470 = vst [vmem:[#allocation16_spill] sm:$0xff] %v2250_v48  ;;  %v2253_v50 = vld [vmem:[#allocation7 + $0x10] sm:$0xff]   ;;  %1682 = vmatpush3.bf16.msra.mxu1 %v2257_v28 }
 0x263   :  { %v643_v46 = vmul.f32 %v2207_v45, %v635_v31  ;;  %v652_v33 = vmax.f32 %v650_v29, 0.0  ;;  %2471 = vst [vmem:[#allocation17_spill] sm:$0xff] %v2253_v50  ;;  %v2260_v31 = vld [vmem:[#allocation7 + $0x48] sm:$0xff]   ;;  %1683 = vmatprep.subr.bf16.mxu1 %v2461_v0  ;;  %v2266_v29 = vld [vmem:[#allocation7 + $0x80] sm:$0xff]  }
 0x264   :  { %2472 = vst [vmem:[#allocation18_spill] sm:$0xff] %v2260_v31 }
 0x265   :  { %v651_v32 = vadd.f32 %v2214_v30, %v643_v46  ;;  %v2262_v46 = vld [vmem:[#allocation7 + $0x8] sm:$0xff]  }
 0x266   :  { %2473 = vst [vmem:[#allocation19_spill] sm:$0xff] %v2262_v46  ;;  %1684 = vmatpush3.bf16.msra.mxu1 %v2266_v29 }
 0x267   :  { %v653_v34 = vmax.f32 %v651_v32, 0.0  ;;  %v2270_v32 = vld [vmem:[#allocation7 + $0x40] sm:$0xff]   ;;  %1695 = vmatprep.subr.bf16.mxu1 %v2461_v0 }
 0x268   :  { %2474 = vst [vmem:[#allocation20_spill] sm:$0xff] %v2270_v32 }
 0x269   :  { %v654_v36 = vpack.c.bf16 %v653_v34, %v652_v33  ;;  %v2272_v33 = vld [vmem:[#allocation7] sm:$0xff]   ;;  %v2280_v34 = vld [vmem:[%s2441_s0 + $0x8] sm:$0xff]  }
 0x26a   :  { %2475 = vst [vmem:[#allocation21_spill] sm:$0xff] %v2272_v33 }
 0x26b   :  { %1663 = vmatprep.subr.bf16.mxu0 %v654_v36 }
 0x26c   :  { %1664 = vmatpush3.bf16.msra.mxu0 %v654_v36 }
 0x26d   :  { %1509 = vmatprep.subr.bf16.mxu0 %v2219_v37 }
 0x26f   :  { %1666 = vmatmul.mubr.msk.bf16.vlgmr.msra.gmra.mxu0 %vm225_vm0, %v2033_v3 }
 0x270   :  { %1510 = vmatpush3.bf16.msra.mxu0 %v2221_v49 }
 0x271   :  { %1511 = vmatprep.subr.bf16.mxu0 %v2224_v35 }
 0x274   :  { %1512 = vmatpush3.bf16.msra.mxu0 %v2229_v39 }
 0x275   :  { %1513 = vmatprep.subr.bf16.mxu0 %v2232_v40 }
 0x278   :  { %1514 = vmatpush3.bf16.msra.mxu0 %v2235_v41 }
 0x279   :  { %1515 = vmatprep.subr.bf16.mxu0 %v2238_v42 }
 0x27c   :  { %1516 = vmatpush3.bf16.msra.mxu0 %v2241_v43 }
 0x27d   :  { %1517 = vmatprep.subr.bf16.mxu0 %v2244_v44 }
 0x280   :  { %1518 = vmatpush3.bf16.msra.mxu0 %v2247_v47 }
 0x281   :  { %1519 = vmatprep.subr.bf16.mxu0 %v2250_v48 }
 0x284   :  { %1520 = vmatpush3.bf16.msra.mxu0 %v2253_v50 }
 0x285   :  { %1521 = vmatprep.subr.bf16.mxu0 %v2260_v31 }
 0x288   :  { %1522 = vmatpush3.bf16.msra.mxu0 %v2262_v46  ;;  %v603_v46 = vpop.f32.mrf.mxu1 }
 0x289   :  { %1523 = vmatprep.subr.bf16.mxu0 %v2270_v32 }
 0x28a   :  { %v1661_v31 = vpop.f32.mrf.mxu1 }
 0x28c   :  { %1524 = vmatpush3.bf16.msra.mxu0 %v2272_v33  ;;  %v2283_v50 = vpop.f32.mrf.mxu1  ;;  %v2476_v33 = vmov 0.0  }
 0x28d   :  { %1689 = vmatprep.subr.bf16.mxu0 %v2280_v34 }
 0x28e   :  { %v1662_v48 = vpop.f32.mrf.mxu1 }
 0x32f   :  { %v1667_v47 = vpop.f32.mrf.mxu0 }
 0x331   :  { %v689_v44 = vpop.f32.mrf.mxu0 }
 0x333   :  { %v1668_v43 = vpop.f32.mrf.mxu0 }
 0x334   :  { %v705_v0 = vpack.c.bf16 %v1668_v43, %v1667_v47 }
 0x335   :  { %v692_v42 = vpop.f32.mrf.mxu0 }
 0x336   :  { %v704_v32 = vpack.c.bf16 %v692_v42, %v689_v44  ;;  %1686 = vmatmul.mubr.bf16.vlgmr.msra.gmra.mxu1 %v705_v0 }
 0x337   :  { %1696 = vmatpush3.bf16.msra.mxu1 %v2038_v4  ;;  %1711 = vmatprep.mubr.msk.bf16.mxu1 %vm1940_vm1, %v2476_v33 }
 0x338   :  { %888 = vmatprep.mubr.bf16.mxu0 %v704_v32  ;;  %1697 = vmatprep.subr.bf16.mxu1 %v2476_v33 }
 0x339   :  { %889 = vmatmul.mubr.bf16.vlgmr.msra.gmra.mxu0 %v654_v36 }
 0x33a   :  { %1690 = vmatpush3.bf16.msra.mxu0 %v2280_v34  ;;  %1691 = vmatprep.mubr.msk.bf16.mxu0 %vm225_vm0, %v2027_v2 }
 0x33b   :  { %1543 = vmatprep.subr.bf16.mxu0 %v2040_v5  ;;  %1698 = vmatpush3.bf16.msra.mxu1 %v2048_v7  ;;  %v2332_v7 = vld [vmem:[%s2450_s9] ss:$0 sm:$0xff] }
 0x33c   :  { %1699 = vmatprep.subr.bf16.mxu1 %v2476_v33 }
 0x33f   :  { %1700 = vmatpush3.bf16.msra.mxu1 %v2058_v10 }
 0x340   :  { %1701 = vmatprep.subr.bf16.mxu1 %v2476_v33 }
 0x341   :  { %1692 = vmatmul.mubr.msk.bf16.vlgmr.msra.gmra.mxu0 %vm225_vm0, %v2033_v3 }
 0x342   :  { %1544 = vmatpush3.bf16.msra.mxu0 %v2043_v6  ;;  %v2327_v6 = vld [vmem:[%s2446_s5] ss:$0 sm:$0xff] }
 0x343   :  { %1545 = vmatprep.subr.bf16.mxu0 %v2052_v8  ;;  %1702 = vmatpush3.bf16.msra.mxu1 %v2067_v13 }
 0x344   :  { %1703 = vmatprep.subr.bf16.mxu1 %v2476_v33 }
 0x346   :  { %1546 = vmatpush3.bf16.msra.mxu0 %v2054_v9 }
 0x347   :  { %1547 = vmatprep.subr.bf16.mxu0 %v2061_v11  ;;  %1704 = vmatpush3.bf16.msra.mxu1 %v2080_v17 }
 0x348   :  { %1705 = vmatprep.subr.bf16.mxu1 %v2476_v33 }
 0x34a   :  { %1548 = vmatpush3.bf16.msra.mxu0 %v2064_v12  ;;  %v604_v12 = vadd.f32 %v2327_v6, %v603_v46 }
 0x34b   :  { %1549 = vmatprep.subr.bf16.mxu0 %v2070_v14  ;;  %1706 = vmatpush3.bf16.msra.mxu1 %v2086_v19 }
 0x34c   :  { %1707 = vmatprep.subr.bf16.mxu1 %v2476_v33 }
 0x34e   :  { %1550 = vmatpush3.bf16.msra.mxu0 %v2074_v15 }
 0x34f   :  { %1551 = vmatprep.subr.bf16.mxu0 %v2077_v16  ;;  %1708 = vmatpush3.bf16.msra.mxu1 %v2100_v22 }
 0x350   :  { %1709 = vmatprep.subr.bf16.mxu1 %v2476_v33 }
 0x352   :  { %1552 = vmatpush3.bf16.msra.mxu0 %v2083_v18  ;;  %v607_v18 = vadd.f32 %v2327_v6, %v2283_v50 }
 0x353   :  { %1553 = vmatprep.subr.bf16.mxu0 %v2089_v20  ;;  %1710 = vmatpush3.bf16.msra.mxu1 %v2109_v25 }
 0x356   :  { %1554 = vmatpush3.bf16.msra.mxu0 %v2092_v21 }
 0x357   :  { %1555 = vmatprep.subr.bf16.mxu0 %v2103_v23 }
 0x35a   :  { %1556 = vmatpush3.bf16.msra.mxu0 %v2105_v24 }
 0x35b   :  { %1557 = vmatprep.subr.bf16.mxu0 %v2113_v26 }
 0x35e   :  { %1558 = vmatpush3.bf16.msra.mxu0 %v2115_v27 }
 0x35f   :  { %1715 = vmatprep.subr.bf16.mxu0 %v2476_v33 }
 0x3f6   :  { %v931_v0 = vpop.f32.mrf.mxu1 }
 0x3f8   :  { %v1687_v3 = vpop.f32.mrf.mxu1 }
 0x3f9   :  { %v1525_v4 = vpop.f32.mrf.mxu0 }
 0x3fa   :  { %v934_v5 = vpop.f32.mrf.mxu1 }
 0x3fb   :  { %v1526_v8 = vpop.f32.mrf.mxu0 }
 0x3fc   :  { %v1527_v9 = vadd.f32 %v1526_v8, %v1525_v4  ;;  %v1688_v10 = vpop.f32.mrf.mxu1 }
 0x3fd   :  { %v1528_v11 = vpop.f32.mrf.mxu0 }
 0x3fe   :  { %v891_v13 = vadd.f32 %v1527_v9, %v2332_v7 }
 0x3ff   :  { %v1529_v14 = vpop.f32.mrf.mxu0 }
 0x400   :  { %v932_v15 = vadd.f32 %v931_v0, %v891_v13  ;;  %v1530_v16 = vadd.f32 %v1529_v14, %v1528_v11 }
 0x401   :  { %v1693_v17 = vpop.f32.mrf.mxu0 }
 0x402   :  { %v894_v19 = vadd.f32 %v1530_v16, %v2332_v7  ;;  %v2339_v20 = vadd.f32 %v932_v15, %v604_v12 }
 0x403   :  { %v1027_v21 = vpop.f32.mrf.mxu0 }
 0x404   :  { %v935_v22 = vadd.f32 %v934_v5, %v894_v19  ;;  %v946_v42 = vmul.f32 %v2339_v20, %v2339_v20 }
 0x405   :  { %v1694_v23 = vpop.f32.mrf.mxu0 }
 0x406   :  { %v1043_v24 = vpack.c.bf16 %v1694_v23, %v1693_v17  ;;  %v2341_v25 = vadd.f32 %v935_v22, %v607_v18 }
 0x407   :  { %v1030_v26 = vpop.f32.mrf.mxu0 }
 0x408   :  { %v1042_v27 = vpack.c.bf16 %v1030_v26, %v1027_v21  ;;  %1712 = vmatmul.mubr.bf16.vlgmr.msra.gmra.mxu1 %v1043_v24  ;;  %v947_v43 = vmul.f32 %v2341_v25, %v2341_v25 }
 0x409   :  { %1737 = vmatprep.mubr.msk.bf16.mxu1 %vm225_vm0, %v2027_v2 }
 0x40a   :  { %1076 = vmatprep.mubr.bf16.mxu0 %v1042_v27 }
 0x40b   :  { %1077 = vmatmul.mubr.bf16.vlgmr.msra.gmra.mxu0 %v2280_v34 }
 0x40c   :  { %1716 = vmatpush3.bf16.msra.mxu0 %v2144_v51  ;;  %1731 = vmatprep.mubr.msk.bf16.mxu0 %vm1940_vm1, %v2476_v33 }
 0x40d   :  { %1717 = vmatprep.subr.bf16.mxu0 %v2476_v33 }
 0x410   :  { %1718 = vmatpush3.bf16.msra.mxu0 %v2147_v52 }
 0x411   :  { %1719 = vmatprep.subr.bf16.mxu0 %v2476_v33 }
 0x414   :  { %1720 = vmatpush3.bf16.msra.mxu0 %v2151_v53 }
 0x415   :  { %1721 = vmatprep.subr.bf16.mxu0 %v2476_v33 }
 0x418   :  { %1722 = vmatpush3.bf16.msra.mxu0 %v2155_v54 }
 0x419   :  { %1723 = vmatprep.subr.bf16.mxu0 %v2476_v33 }
 0x41c   :  { %1724 = vmatpush3.bf16.msra.mxu0 %v2159_v55 }
 0x41d   :  { %1725 = vmatprep.subr.bf16.mxu0 %v2476_v33 }
 0x420   :  { %1726 = vmatpush3.bf16.msra.mxu0 %v2163_v56 }
 0x421   :  { %1727 = vmatprep.subr.bf16.mxu0 %v2476_v33 }
 0x424   :  { %1728 = vmatpush3.bf16.msra.mxu0 %v2167_v57 }
 0x425   :  { %1729 = vmatprep.subr.bf16.mxu0 %v2476_v33 }
 0x428   :  { %1730 = vmatpush3.bf16.msra.mxu0 %v2171_v58 }
 0x429   :  { %1741 = vmatprep.subr.bf16.mxu0 %v2476_v33 }
 0x42b   :  { %1732 = vmatmul.mubr.bf16.vlgmr.msra.gmra.mxu0 %v2280_v34 }
 0x42c   :  { %1742 = vmatpush3.bf16.msra.mxu0 %v2175_v59  ;;  %1757 = vmatprep.mubr.msk.bf16.mxu0 %vm1940_vm1, %v2476_v33 }
 0x42d   :  { %1743 = vmatprep.subr.bf16.mxu0 %v2476_v33 }
 0x430   :  { %1744 = vmatpush3.bf16.msra.mxu0 %v2180_v60 }
 0x431   :  { %1745 = vmatprep.subr.bf16.mxu0 %v2476_v33 }
 0x434   :  { %1746 = vmatpush3.bf16.msra.mxu0 %v2186_v61 }
 0x435   :  { %1747 = vmatprep.subr.bf16.mxu0 %v2476_v33 }
 0x438   :  { %1748 = vmatpush3.bf16.msra.mxu0 %v2190_v62 }
 0x439   :  { %1749 = vmatprep.subr.bf16.mxu0 %v2476_v33 }
 0x43c   :  { %1750 = vmatpush3.bf16.msra.mxu0 %v2194_v63 }
 0x43d   :  { %1751 = vmatprep.subr.bf16.mxu0 %v2476_v33 }
 0x440   :  { %1752 = vmatpush3.bf16.msra.mxu0 %v2198_v1 }
 0x441   :  { %1753 = vmatprep.subr.bf16.mxu0 %v2476_v33 }
 0x444   :  { %1754 = vmatpush3.bf16.msra.mxu0 %v2257_v28 }
 0x445   :  { %1755 = vmatprep.subr.bf16.mxu0 %v2476_v33 }
 0x448   :  { %1756 = vmatpush3.bf16.msra.mxu0 %v2266_v29 }
 0x4c8   :  { %v1119_v2 = vpop.f32.mrf.mxu1 }
 0x4ca   :  { %v1713_v51 = vpop.f32.mrf.mxu1 }
 0x4cb   :  { %v1559_v52 = vpop.f32.mrf.mxu0 }
 0x4cc   :  { %v1122_v53 = vpop.f32.mrf.mxu1 }
 0x4cd   :  { %v1560_v54 = vpop.f32.mrf.mxu0 }
 0x4ce   :  { %v1561_v55 = vadd.f32 %v1560_v54, %v1559_v52  ;;  %v1714_v56 = vpop.f32.mrf.mxu1 }
 0x4cf   :  { %v1562_v57 = vpop.f32.mrf.mxu0 }
 0x4d0   :  { %v1079_v58 = vadd.f32 %v1561_v55, %v2130_v38  ;;  %v2397_v55 = vld [vmem:[%s2451_s10] ss:$0 sm:$0xff] }
 0x4d1   :  { %v1563_v59 = vpop.f32.mrf.mxu0 }
 0x4d2   :  { %v1564_v60 = vadd.f32 %v1563_v59, %v1562_v57  ;;  %v1120_v61 = vadd.f32 %v1119_v2, %v1079_v58  ;;  %v2403_v58 = vld [vmem:[%s2452_s11] ss:$0 sm:$0xff] }
 0x4d4   :  { %v1082_v62 = vadd.f32 %v1564_v60, %v2130_v38  ;;  %1167 = vadd.xlane.f32.xlu0 %v1120_v61  ;;  %v1173_v1 = vmul.f32 %v1120_v61, %v1120_v61 }
 0x4d6   :  { %v1123_v63 = vadd.f32 %v1122_v53, %v1082_v62 }
 0x4d8   :  { %1169 = vadd.xlane.f32.xlu1 %v1123_v63  ;;  %1175 = vadd.xlane.f32.xlu0 %v1173_v1  ;;  %v1174_v36 = vmul.f32 %v1123_v63, %v1123_v63 }
 0x4dc   :  { %1177 = vadd.xlane.f32.xlu1 %v1174_v36  ;;  %940 = vadd.xlane.f32.xlu0 %v2339_v20 }
 0x4e0   :  { %942 = vadd.xlane.f32.xlu1 %v2341_v25  ;;  %948 = vadd.xlane.f32.xlu0 %v946_v42  ;;  %v2478_v42 = vld [vmem:[#allocation13_spill] sm:$0xff] }
 0x4e4   :  { %950 = vadd.xlane.f32.xlu1 %v947_v43  ;;  %v2479_v43 = vld [vmem:[#allocation14_spill] sm:$0xff] }
 0x55d   :  { %v1168_v38 = vpop.xlane.xlu0 %1167 }
 0x55e   :  { %v1171_v44 = vmul.f32 0.0625, %v1168_v38  ;;  %v2480_v38 = vld [vmem:[#allocation15_spill] sm:$0xff] }
 0x560   :  { %v1181_v50 = vmul.f32 %v1171_v44, %v1171_v44  ;;  %v1185_v21 = vsub.f32 %v1120_v61, %v1171_v44  ;;  %v2481_v44 = vld [vmem:[#allocation16_spill] sm:$0xff] }
 0x561   :  { %v1170_v47 = vpop.xlane.xlu1 %1169  ;;  %v1176_v48 = vpop.xlane.xlu0 %1175 }
 0x562   :  { %v1172_v28 = vmul.f32 0.0625, %v1170_v47  ;;  %v1179_v31 = vmul.f32 0.0625, %v1176_v48  ;;  %v2482_v47 = vld [vmem:[#allocation17_spill] sm:$0xff] }
 0x564   :  { %v1183_v46 = vsub.f32 %v1179_v31, %v1181_v50  ;;  %v1182_v33 = vmul.f32 %v1172_v28, %v1172_v28  ;;  %v1186_v24 = vsub.f32 %v1123_v63, %v1172_v28 }
 0x565   :  { %v1178_v29 = vpop.xlane.xlu1 %1177  ;;  %v941_v32 = vpop.xlane.xlu0 %940 }
 0x566   :  { %v1187_v34 = vadd.f32 1e-06, %v1183_v46  ;;  %v1180_v0 = vmul.f32 0.0625, %v1178_v29  ;;  %v944_v3 = vmul.f32 0.0625, %v941_v32 }
 0x568   :  { %1835 = vrsqrt.f32 %v1187_v34  ;;  %v1184_v4 = vsub.f32 %v1180_v0, %v1182_v33  ;;  %v954_v10 = vmul.f32 %v944_v3, %v944_v3  ;;  %v958_v51 = vsub.f32 %v2339_v20, %v944_v3 }
 0x569   :  { %v943_v5 = vpop.xlane.xlu1 %942  ;;  %v949_v8 = vpop.xlane.xlu0 %948 }
 0x56a   :  { %v1188_v9 = vadd.f32 1e-06, %v1184_v4  ;;  %v945_v11 = vmul.f32 0.0625, %v943_v5  ;;  %v952_v12 = vmul.f32 0.0625, %v949_v8 }
 0x56c   :  { %1837 = vrsqrt.f32 %v1188_v9  ;;  %v956_v13 = vsub.f32 %v952_v12, %v954_v10  ;;  %v955_v15 = vmul.f32 %v945_v11, %v945_v11  ;;  %v959_v20 = vsub.f32 %v2341_v25, %v945_v11  ;;  %v1847_v25 = vld [vmem:[%s2442_s1 + $0x8] sm:$0xff]   ;;  %s1941_s1 = smov [#allocation8]  }
 0x56d   :  { %v951_v14 = vpop.xlane.xlu1 %950  ;;  %s1373_s15 = sshll.u32 %s1941_s1, 4  ;;  %s1374_s15 = int_to_ptr.vmem [resolvable:$true] %s1373_s15 }
 0x56e   :  { %v960_v16 = vadd.f32 1e-06, %v956_v13  ;;  %v953_v17 = vmul.f32 0.0625, %v951_v14  ;;  %s1908_s16 = scalar_lea.vmem %s1374_s15, 512  ;;  %p1913_p2 = scmp.lt.s32.totalorder %s1374_s15, %s1374_s15 }
 0x56f   :  { %p1909_p1 = scmp.ne.s32.totalorder %s1374_s15, %s1908_s16  ;;  %p1914_p3 = scmp.lt.s32.totalorder %s1908_s16, %s1908_s16 }
 0x570   :  { %1839 = vrsqrt.f32 %v960_v16  ;;  %v957_v18 = vsub.f32 %v953_v17, %v955_v15 }
 0x571   :  { %p1915_p4 = por %p1914_p3, %p1913_p2 }
 0x572   :  { %v961_v19 = vadd.f32 1e-06, %v957_v18 }
 0x573   :  { %p1916_p5 = pnand %p1915_p4, %p1909_p1 }
 0x574   :  { %1841 = vrsqrt.f32 %v961_v19 }
 0x575   :  { %v1836_v22 = vpop.eup %1835 }
 0x576   :  { %v1191_v23 = vmul.f32 %v1836_v22, %v1185_v21 }
 0x578   :  { %v1193_v26 = vmul.f32 %v2207_v45, %v1191_v23 }
 0x579   :  { %v1838_v27 = vpop.eup %1837 }
 0x57a   :  { %v1192_v2 = vmul.f32 %v1838_v27, %v1186_v24  ;;  %v1195_v53 = vadd.f32 %v2214_v30, %v1193_v26 }
 0x57c   :  { %v1194_v52 = vmul.f32 %v2207_v45, %v1192_v2  ;;  %v1197_v59 = vmax.f32 %v1195_v53, 0.0 }
 0x57d   :  { %v1840_v54 = vpop.eup %1839 }
 0x57e   :  { %v964_v56 = vmul.f32 %v1840_v54, %v958_v51  ;;  %v1196_v57 = vadd.f32 %v2214_v30, %v1194_v52 }
 0x580   :  { %v1198_v45 = vmax.f32 %v1196_v57, 0.0  ;;  %v972_v60 = vmul.f32 %v2397_v55, %v964_v56 }
 0x581   :  { %v1842_v61 = vpop.eup %1841 }
 0x582   :  { %v965_v62 = vmul.f32 %v1842_v61, %v959_v20  ;;  %v1199_v63 = vpack.c.bf16 %v1198_v45, %v1197_v59  ;;  %v980_v1 = vadd.f32 %v2403_v58, %v972_v60 }
 0x584   :  { %1735 = vmatprep.subr.bf16.mxu1 %v1199_v63  ;;  %v973_v36 = vmul.f32 %v2397_v55, %v965_v62  ;;  %982 = vst [vmem:[#allocation8] sm:$0xff] %v980_v1 }
 0x585   :  { %1736 = vmatpush3.bf16.msra.mxu1 %v1199_v63 }
 0x586   :  { %1586 = vmatprep.subr.bf16.mxu1 %v2219_v37  ;;  %v981_v30 = vadd.f32 %v2403_v58, %v973_v36  ;;  %v2477_v37 = vld [vmem:[#allocation12_spill] sm:$0xff] }
 0x588   :  { %1738 = vmatmul.mubr.msk.bf16.vlgmr.msra.gmra.mxu1 %vm225_vm0, %v1847_v25  ;;  %983 = vst [vmem:[#allocation8 + $0x8] sm:$0xff] %v981_v30 }
 0x589   :  { %1587 = vmatpush3.bf16.msra.mxu1 %v2221_v49  ;;  %v2483_v49 = vld [vmem:[#allocation18_spill] sm:$0xff] }
 0x58a   :  { %1588 = vmatprep.subr.bf16.mxu1 %v2224_v35  ;;  %v2484_v35 = vld [vmem:[#allocation19_spill] sm:$0xff] }
 0x58d   :  { %1589 = vmatpush3.bf16.msra.mxu1 %v2229_v39  ;;  %v2485_v39 = vld [vmem:[#allocation20_spill] sm:$0xff] }
 0x58e   :  { %1590 = vmatprep.subr.bf16.mxu1 %v2232_v40  ;;  %v2486_v40 = vld [vmem:[#allocation21_spill] sm:$0xff] }
 0x591   :  { %1591 = vmatpush3.bf16.msra.mxu1 %v2235_v41  ;;  %v1160_v41 = vpop.f32.mrf.mxu0 }
 0x592   :  { %1592 = vmatprep.subr.bf16.mxu1 %v2477_v37  ;;  %v1161_v14 = vadd.f32 %v2327_v6, %v1160_v41 }
 0x593   :  { %v1733_v48 = vpop.f32.mrf.mxu0 }
 0x595   :  { %1593 = vmatpush3.bf16.msra.mxu1 %v2478_v42  ;;  %v1163_v50 = vpop.f32.mrf.mxu0 }
 0x596   :  { %1594 = vmatprep.subr.bf16.mxu1 %v2479_v43  ;;  %v1164_v19 = vadd.f32 %v2327_v6, %v1163_v50 }
 0x597   :  { %v1734_v28 = vpop.f32.mrf.mxu0 }
 0x599   :  { %1595 = vmatpush3.bf16.msra.mxu1 %v2480_v38 }
 0x59a   :  { %1596 = vmatprep.subr.bf16.mxu1 %v2481_v44 }
 0x59d   :  { %1597 = vmatpush3.bf16.msra.mxu1 %v2482_v47 }
 0x59e   :  { %1598 = vmatprep.subr.bf16.mxu1 %v2483_v49 }
 0x5a1   :  { %1599 = vmatpush3.bf16.msra.mxu1 %v2484_v35 }
 0x5a2   :  { %1600 = vmatprep.subr.bf16.mxu1 %v2485_v39 }
 0x5a5   :  { %1601 = vmatpush3.bf16.msra.mxu1 %v2486_v40 }
 0x648   :  { %v1739_v31 = vpop.f32.mrf.mxu1 }
 0x64a   :  { %v1234_v46 = vpop.f32.mrf.mxu1 }
 0x64c   :  { %v1740_v29 = vpop.f32.mrf.mxu1 }
 0x64d   :  { %v1250_v32 = vpack.c.bf16 %v1740_v29, %v1739_v31 }
 0x64e   :  { %v1237_v33 = vpop.f32.mrf.mxu1 }
 0x64f   :  { %v1249_v34 = vpack.c.bf16 %v1237_v33, %v1234_v46  ;;  %1758 = vmatmul.mubr.bf16.vlgmr.msra.gmra.mxu0 %v1250_v32 }
 0x651   :  { %1283 = vmatprep.mubr.bf16.mxu1 %v1249_v34 }
 0x652   :  { %1284 = vmatmul.mubr.bf16.vlgmr.msra.gmra.mxu1 %v1199_v63 }
 0x70f   :  { %v1326_v0 = vpop.f32.mrf.mxu0 }
 0x711   :  { %v1759_v3 = vpop.f32.mrf.mxu0 }
 0x712   :  { %v1602_v4 = vpop.f32.mrf.mxu1 }
 0x713   :  { %v1329_v5 = vpop.f32.mrf.mxu0 }
 0x714   :  { %v1603_v8 = vpop.f32.mrf.mxu1 }
 0x715   :  { %v1604_v9 = vadd.f32 %v1603_v8, %v1602_v4  ;;  %v1760_v10 = vpop.f32.mrf.mxu0 }
 0x716   :  { %v1605_v11 = vpop.f32.mrf.mxu1 }
 0x717   :  { %v1286_v12 = vadd.f32 %v1604_v9, %v2332_v7 }
 0x718   :  { %v1606_v13 = vpop.f32.mrf.mxu1 }
 0x719   :  { %v1327_v15 = vadd.f32 %v1326_v0, %v1286_v12  ;;  %v1607_v16 = vadd.f32 %v1606_v13, %v1605_v11 }
 0x71b   :  { %v1289_v17 = vadd.f32 %v1607_v16, %v2332_v7  ;;  %v1333_v18 = vadd.f32 %v1327_v15, %v1161_v14 }
 0x71d   :  { %v1330_v21 = vadd.f32 %v1329_v5, %v1289_v17  ;;  %1335 = vadd.xlane.f32.xlu0 %v1333_v18  ;;  %v1341_v23 = vmul.f32 %v1333_v18, %v1333_v18 }
 0x71f   :  { %v1334_v22 = vadd.f32 %v1330_v21, %v1164_v19 }
 0x721   :  { %1337 = vadd.xlane.f32.xlu1 %v1334_v22  ;;  %1343 = vadd.xlane.f32.xlu0 %v1341_v23  ;;  %v1342_v24 = vmul.f32 %v1334_v22, %v1334_v22 }
 0x725   :  { %1345 = vadd.xlane.f32.xlu1 %v1342_v24 }
 0x7a6   :  { %v1336_v26 = vpop.xlane.xlu0 %1335 }
 0x7a7   :  { %v1339_v27 = vmul.f32 0.0625, %v1336_v26 }
 0x7a9   :  { %v1349_v52 = vmul.f32 %v1339_v27, %v1339_v27  ;;  %v1353_v60 = vsub.f32 %v1333_v18, %v1339_v27 }
 0x7aa   :  { %v1338_v2 = vpop.xlane.xlu1 %1337  ;;  %v1344_v51 = vpop.xlane.xlu0 %1343 }
 0x7ab   :  { %v1340_v53 = vmul.f32 0.0625, %v1338_v2  ;;  %v1347_v54 = vmul.f32 0.0625, %v1344_v51 }
 0x7ad   :  { %v1351_v56 = vsub.f32 %v1347_v54, %v1349_v52  ;;  %v1350_v57 = vmul.f32 %v1340_v53, %v1340_v53  ;;  %v1354_v63 = vsub.f32 %v1334_v22, %v1340_v53 }
 0x7ae   :  { %v1346_v7 = vpop.xlane.xlu1 %1345 }
 0x7af   :  { %v1355_v20 = vadd.f32 1e-06, %v1351_v56  ;;  %v1348_v6 = vmul.f32 0.0625, %v1346_v7 }
 0x7b1   :  { %1843 = vrsqrt.f32 %v1355_v20  ;;  %v1352_v59 = vsub.f32 %v1348_v6, %v1350_v57 }
 0x7b3   :  { %v1356_v45 = vadd.f32 1e-06, %v1352_v59 }
 0x7b5   :  { %1845 = vrsqrt.f32 %v1356_v45 }
 0x7be   :  { %v1844_v61 = vpop.eup %1843 }
 0x7bf   :  { %v1359_v62 = vmul.f32 %v1844_v61, %v1353_v60 }
 0x7c1   :  { %v1361_v1 = vmul.f32 %v2397_v55, %v1359_v62 }
 0x7c2   :  { %v1846_v36 = vpop.eup %1845 }
 0x7c3   :  { %v1360_v30 = vmul.f32 %v1846_v36, %v1354_v63  ;;  %v1363_v25 = vadd.f32 %v2403_v58, %v1361_v1 }
 0x7c5   :  { %v1362_v37 = vmul.f32 %v2397_v55, %v1360_v30  ;;  %1366 = vst [vmem:[#allocation8 + $0x10] sm:$0xff] %v1363_v25 }
 0x7c7   :  { %v1364_v42 = vadd.f32 %v2403_v58, %v1362_v37 }
 0x7c9   :  { %1367 = vst [vmem:[#allocation8 + $0x18] sm:$0xff] %v1364_v42 }
 0x7ca   :  { %1919 = shalt.err (!%p1916_p5)
}
 0x7cb   :  { %s1942_s17 = smov 128   ;;  %s1943_s4 = smov 8  }
 0x7cc   :  { %1379 = dma.vmem_to_hbm [thread:$0]  %s1374_s15, 512, %s2453_s12, [#allocation4], %s1942_s17, %s1942_s17, %s1943_s4  }
 0x7cd   :  { %1932 = dma.done.wait [#allocation4], 512  }
 0x7ce   :  { %1933 = vsyncadd [#allocation4], 4294966784 }
 0x7cf   :  { %1383 = vsyncpa [#allocation3], 1 }
 0x7d0   :  { %1384 = vsyncpa [#allocation6], 1 }
 0x7d1   :  { %1385 = vsyncpa [#allocation4], 1 }

</bundles_post_ra>
